<compile_context>
chip_gen: v5e
topology: v5e:2x2
jax: 0.10.0
libtpu: 0.0.40
codegen_flags: <defaults>
</compile_context>

<pallas_src>
import jax
import jax.numpy as jnp
from jax.experimental import pallas as pl
from jax.experimental.pallas import tpu as pltpu

raw_text = ('We are about to study the idea of a computational process.\n'
            'Computational processes are abstract beings that inhabit computers.\n'
            'As they evolve, processes manipulate other abstract things called data.\n'
            'The evolution of a process is directed by a pattern of rules\n'
            'called a program. People create programs to direct processes. In effect,\n'
            'we conjure the spirits of the computer with our spells.').split()

VOCAB_SIZE = len(set(raw_text))   # same vocab construction as the PyTorch script
CONTEXT_SIZE = 4                  # 2 words left + 2 words right (typical CBOW)
EMBEDDING_SIZE = 32
HIDDEN = 128

BATCH = 256        # context windows processed per pallas_call
BLOCK_B = 128      # activation rows per grid step (fills MXU rows / sublanes)


def _make_cbow_kernel(context_size, embedding_size, hidden, vocab_size,
                      block_b, v_pad):
    def cbow_kernel(idx_ref, emb_ref, w1_ref, b1_ref, w2_ref, b2_ref, out_ref):
        idx = idx_ref[...]                       # (block_b, context_size) int32
        emb = emb_ref[...]                       # (v_pad, embedding_size)
        lane_v = jax.lax.broadcasted_iota(jnp.int32, (block_b, v_pad), 1)

        # Embedding gather as one-hot matmuls, accumulated straight into the
        # hidden pre-activations (no lane-axis concat, all work on MXU/VPU).
        acc = jnp.zeros((block_b, hidden), jnp.float32)
        for i in range(context_size):
            onehot = (lane_v == idx[:, i:i + 1]).astype(emb.dtype)   # (B, Vp)
            e_i = jnp.dot(onehot, emb, preferred_element_type=jnp.float32)
            w1_i = w1_ref[pl.ds(i * embedding_size, embedding_size), :]
            acc = acc + jnp.dot(e_i.astype(w1_i.dtype), w1_i,
                                preferred_element_type=jnp.float32)

        # linear1 bias + relu (kept in f32 on the VPU)
        h = jnp.maximum(acc + b1_ref[...], 0.0)

        # linear2 over the lane-dense padded vocab
        logits = jnp.dot(h.astype(w2_ref.dtype), w2_ref[...],
                         preferred_element_type=jnp.float32) + b2_ref[...]
        # padded vocab lanes must not perturb the softmax normalizer
        logits = jnp.where(lane_v < vocab_size, logits, jnp.float32(-1e30))

        # numerically stable log_softmax in f32
        m = jnp.max(logits, axis=-1, keepdims=True)
        shifted = logits - m
        lse = jnp.log(jnp.sum(jnp.exp(shifted), axis=-1, keepdims=True))
        out_ref[...] = (shifted - lse).astype(out_ref.dtype)

    return cbow_kernel


def cbow_forward(indices, emb, w1_t, b1, w2_t, b2, *,
                 block_b=BLOCK_B, matmul_dtype=jnp.float32):
    """Batched CBOW forward.

    indices : (B, context_size) int32
    emb     : (vocab_size, embedding_size) f32
    w1_t    : (context_size*embedding_size, hidden) f32   (PyTorch W1, transposed)
    b1      : (1, hidden) f32
    w2_t    : (hidden, vocab_size) f32                     (PyTorch W2, transposed)
    b2      : (1, vocab_size) f32
    returns : (B, vocab_size) f32 log-probabilities

    Set matmul_dtype=jnp.bfloat16 on v6e/v7x for MXU peak; accumulation, bias
    adds and the log_softmax always stay in f32.
    """
    B, context_size = indices.shape
    vocab_size, embedding_size = emb.shape
    hidden = w1_t.shape[1]

    # Lane-dense padding of the vocab axis and whole-block batch padding.
    v_pad = max(128, pl.cdiv(vocab_size, 128) * 128)
    b_pad = pl.cdiv(B, block_b) * block_b

    # Clamp indices host-side (no runtime bounds check on-chip; the one-hot
    # gather cannot read out-of-bounds VMEM, but clamping keeps semantics sane).
    idx = jnp.clip(indices.astype(jnp.int32), 0, vocab_size - 1)
    idx = jnp.pad(idx, ((0, b_pad - B), (0, 0)))

    emb_p = jnp.pad(emb, ((0, v_pad - vocab_size), (0, 0))).astype(matmul_dtype)
    w1_p = w1_t.astype(matmul_dtype)
    w2_p = jnp.pad(w2_t, ((0, 0), (0, v_pad - vocab_size))).astype(matmul_dtype)
    b1_p = b1.reshape(1, hidden).astype(jnp.float32)
    b2_p = jnp.pad(b2.reshape(1, vocab_size),
                   ((0, 0), (0, v_pad - vocab_size))).astype(jnp.float32)

    kernel = _make_cbow_kernel(context_size, embedding_size, hidden,
                               vocab_size, block_b, v_pad)

    out = pl.pallas_call(
        kernel,
        out_shape=jax.ShapeDtypeStruct((b_pad, v_pad), jnp.float32),
        grid_spec=pltpu.PrefetchScalarGridSpec(
            num_scalar_prefetch=0,
            grid=(b_pad // block_b,),
            in_specs=[
                pl.BlockSpec((block_b, context_size), lambda i: (i, 0)),  # idx
                pl.BlockSpec((v_pad, embedding_size), lambda i: (0, 0)),  # emb
                pl.BlockSpec((context_size * embedding_size, hidden),
                             lambda i: (0, 0)),                           # W1
                pl.BlockSpec((1, hidden), lambda i: (0, 0)),              # b1
                pl.BlockSpec((hidden, v_pad), lambda i: (0, 0)),          # W2
                pl.BlockSpec((1, v_pad), lambda i: (0, 0)),               # b2
            ],
            out_specs=pl.BlockSpec((block_b, v_pad), lambda i: (i, 0)),
        ),
        compiler_params=pltpu.CompilerParams(
            dimension_semantics=("parallel",),   # v7x: shard batch over 2 TCs
        ),
    )(idx, emb_p, w1_p, b1_p, w2_p, b2_p)

    return out[:B, :vocab_size]


def reference_forward(indices, emb, w1_t, b1, w2_t, b2):
    B = indices.shape[0]
    embeds = emb[indices].reshape(B, -1)
    h = jnp.maximum(embeds @ w1_t + b1, 0.0)
    logits = h @ w2_t + b2
    return jax.nn.log_softmax(logits, axis=-1)


if __name__ == "__main__":
    key = jax.random.PRNGKey(0)
    k_emb, k_w1, k_b1, k_w2, k_b2, k_idx = jax.random.split(key, 6)

    in1 = CONTEXT_SIZE * EMBEDDING_SIZE

    # Deterministic parameter init mirroring nn.Embedding / nn.Linear shapes.
    emb = jax.random.normal(k_emb, (VOCAB_SIZE, EMBEDDING_SIZE), dtype=jnp.float32)
    lim1 = 1.0 / (in1 ** 0.5)
    w1 = jax.random.uniform(k_w1, (HIDDEN, in1), minval=-lim1, maxval=lim1,
                            dtype=jnp.float32)           # PyTorch (out, in)
    b1 = jax.random.uniform(k_b1, (HIDDEN,), minval=-lim1, maxval=lim1,
                            dtype=jnp.float32)
    lim2 = 1.0 / (HIDDEN ** 0.5)
    w2 = jax.random.uniform(k_w2, (VOCAB_SIZE, HIDDEN), minval=-lim2, maxval=lim2,
                            dtype=jnp.float32)           # PyTorch (out, in)
    b2 = jax.random.uniform(k_b2, (VOCAB_SIZE,), minval=-lim2, maxval=lim2,
                            dtype=jnp.float32)

    # Glue: transpose to (in, out), biases to (1, out) for the kernel.
    w1_t = w1.T
    w2_t = w2.T
    b1_2d = b1.reshape(1, HIDDEN)
    b2_2d = b2.reshape(1, VOCAB_SIZE)

    # A batch of context windows (what the PyTorch forward receives, batched).
    indices = jax.random.randint(k_idx, (BATCH, CONTEXT_SIZE), 0, VOCAB_SIZE,
                                 dtype=jnp.int32)

    out = cbow_forward(indices, emb, w1_t, b1_2d, w2_t, b2_2d)
    out = jax.block_until_ready(out)

    ref = reference_forward(indices, emb, w1_t, b1_2d, w2_t, b2_2d)
    assert out.shape == (BATCH, VOCAB_SIZE)
    assert jnp.allclose(out, ref, atol=1e-4, rtol=1e-4), \
        float(jnp.max(jnp.abs(out - ref)))

    print("KERNEL_OK")
</pallas_src>

<mosaic_0001>
module attributes {stable_mosaic.version = 11 : i64} {
  func.func @cbow_kernel(%arg0: i32, %arg1: memref<128x4xi32, #tpu.memory_space<vmem>>, %arg2: memref<128x32xf32, #tpu.memory_space<vmem>>, %arg3: memref<128x128xf32, #tpu.memory_space<vmem>>, %arg4: memref<1x128xf32, #tpu.memory_space<vmem>>, %arg5: memref<128x128xf32, #tpu.memory_space<vmem>>, %arg6: memref<1x128xf32, #tpu.memory_space<vmem>>, %arg7: memref<128x128xf32, #tpu.memory_space<vmem>>) attributes {dimension_semantics = [#tpu.dimension_semantics<parallel>], iteration_bounds = array<i64: 2>, scalar_prefetch = 0 : i64, scratch_operands = 0 : i64, tpu.core_type = #tpu.core_type<tc>, window_params = [{transform_indices = @transform_0, window_bounds = array<i64: 128, 4>}, {pipeline_mode = #tpu.pipeline_mode<synchronous>, transform_indices = @transform_1, window_bounds = array<i64: 128, 32>}, {pipeline_mode = #tpu.pipeline_mode<synchronous>, transform_indices = @transform_2, window_bounds = array<i64: 128, 128>}, {pipeline_mode = #tpu.pipeline_mode<synchronous>, transform_indices = @transform_3, window_bounds = array<i64: 1, 128>}, {pipeline_mode = #tpu.pipeline_mode<synchronous>, transform_indices = @transform_4, window_bounds = array<i64: 128, 128>}, {pipeline_mode = #tpu.pipeline_mode<synchronous>, transform_indices = @transform_5, window_bounds = array<i64: 1, 128>}, {transform_indices = @transform_6, window_bounds = array<i64: 128, 128>}]} {
    %c0 = arith.constant 0 : index
    %c0_0 = arith.constant 0 : index
    %0 = vector.load %arg1[%c0, %c0_0] : memref<128x4xi32, #tpu.memory_space<vmem>>, vector<128x4xi32>
    %c0_1 = arith.constant 0 : index
    %c0_2 = arith.constant 0 : index
    %1 = vector.load %arg2[%c0_1, %c0_2] : memref<128x32xf32, #tpu.memory_space<vmem>>, vector<128x32xf32>
    %2 = tpu.iota {dimensions = array<i32: 1>} : vector<128x128xi32>
    %cst = arith.constant 0.000000e+00 : f32
    %3 = vector.broadcast %cst : f32 to vector<128x128xf32>
    %4 = vector.extract_strided_slice %0 {offsets = [0, 0], sizes = [128, 1], strides = [1, 1]} : vector<128x4xi32> to vector<128x1xi32>
    %5 = vector.broadcast %4 : vector<128x1xi32> to vector<128x128xi32>
    %6 = arith.cmpi eq, %2, %5 : vector<128x128xi32>
    %7 = arith.extui %6 : vector<128x128xi1> to vector<128x128xi32>
    %8 = arith.sitofp %7 : vector<128x128xi32> to vector<128x128xf32>
    %cst_3 = arith.constant dense<0.000000e+00> : vector<128x32xf32>
    %9 = tpu.matmul %8, %1, %cst_3 {dimension_numbers = #tpu.dot_dimension_numbers<[1], [0], [0], [1], [0, 0, 1, 1], [], []>} : vector<128x128xf32>, vector<128x32xf32>, vector<128x32xf32> -> vector<128x32xf32>
    %c0_4 = arith.constant 0 : index
    %c0_5 = arith.constant 0 : index
    %10 = vector.load %arg3[%c0_4, %c0_5] : memref<128x128xf32, #tpu.memory_space<vmem>>, vector<32x128xf32>
    %cst_6 = arith.constant dense<0.000000e+00> : vector<128x128xf32>
    %11 = tpu.matmul %9, %10, %cst_6 {dimension_numbers = #tpu.dot_dimension_numbers<[1], [0], [0], [1], [0, 0, 1, 1], [], []>} : vector<128x32xf32>, vector<32x128xf32>, vector<128x128xf32> -> vector<128x128xf32>
    %12 = arith.addf %3, %11 : vector<128x128xf32>
    %13 = vector.extract_strided_slice %0 {offsets = [0, 1], sizes = [128, 1], strides = [1, 1]} : vector<128x4xi32> to vector<128x1xi32>
    %14 = vector.broadcast %13 : vector<128x1xi32> to vector<128x128xi32>
    %15 = arith.cmpi eq, %2, %14 : vector<128x128xi32>
    %16 = arith.extui %15 : vector<128x128xi1> to vector<128x128xi32>
    %17 = arith.sitofp %16 : vector<128x128xi32> to vector<128x128xf32>
    %cst_7 = arith.constant dense<0.000000e+00> : vector<128x32xf32>
    %18 = tpu.matmul %17, %1, %cst_7 {dimension_numbers = #tpu.dot_dimension_numbers<[1], [0], [0], [1], [0, 0, 1, 1], [], []>} : vector<128x128xf32>, vector<128x32xf32>, vector<128x32xf32> -> vector<128x32xf32>
    %c32 = arith.constant 32 : index
    %c0_8 = arith.constant 0 : index
    %19 = vector.load %arg3[%c32, %c0_8] : memref<128x128xf32, #tpu.memory_space<vmem>>, vector<32x128xf32>
    %cst_9 = arith.constant dense<0.000000e+00> : vector<128x128xf32>
    %20 = tpu.matmul %18, %19, %cst_9 {dimension_numbers = #tpu.dot_dimension_numbers<[1], [0], [0], [1], [0, 0, 1, 1], [], []>} : vector<128x32xf32>, vector<32x128xf32>, vector<128x128xf32> -> vector<128x128xf32>
    %21 = arith.addf %12, %20 : vector<128x128xf32>
    %22 = vector.extract_strided_slice %0 {offsets = [0, 2], sizes = [128, 1], strides = [1, 1]} : vector<128x4xi32> to vector<128x1xi32>
    %23 = vector.broadcast %22 : vector<128x1xi32> to vector<128x128xi32>
    %24 = arith.cmpi eq, %2, %23 : vector<128x128xi32>
    %25 = arith.extui %24 : vector<128x128xi1> to vector<128x128xi32>
    %26 = arith.sitofp %25 : vector<128x128xi32> to vector<128x128xf32>
    %cst_10 = arith.constant dense<0.000000e+00> : vector<128x32xf32>
    %27 = tpu.matmul %26, %1, %cst_10 {dimension_numbers = #tpu.dot_dimension_numbers<[1], [0], [0], [1], [0, 0, 1, 1], [], []>} : vector<128x128xf32>, vector<128x32xf32>, vector<128x32xf32> -> vector<128x32xf32>
    %c64 = arith.constant 64 : index
    %c0_11 = arith.constant 0 : index
    %28 = vector.load %arg3[%c64, %c0_11] : memref<128x128xf32, #tpu.memory_space<vmem>>, vector<32x128xf32>
    %cst_12 = arith.constant dense<0.000000e+00> : vector<128x128xf32>
    %29 = tpu.matmul %27, %28, %cst_12 {dimension_numbers = #tpu.dot_dimension_numbers<[1], [0], [0], [1], [0, 0, 1, 1], [], []>} : vector<128x32xf32>, vector<32x128xf32>, vector<128x128xf32> -> vector<128x128xf32>
    %30 = arith.addf %21, %29 : vector<128x128xf32>
    %31 = vector.extract_strided_slice %0 {offsets = [0, 3], sizes = [128, 1], strides = [1, 1]} : vector<128x4xi32> to vector<128x1xi32>
    %32 = vector.broadcast %31 : vector<128x1xi32> to vector<128x128xi32>
    %33 = arith.cmpi eq, %2, %32 : vector<128x128xi32>
    %34 = arith.extui %33 : vector<128x128xi1> to vector<128x128xi32>
    %35 = arith.sitofp %34 : vector<128x128xi32> to vector<128x128xf32>
    %cst_13 = arith.constant dense<0.000000e+00> : vector<128x32xf32>
    %36 = tpu.matmul %35, %1, %cst_13 {dimension_numbers = #tpu.dot_dimension_numbers<[1], [0], [0], [1], [0, 0, 1, 1], [], []>} : vector<128x128xf32>, vector<128x32xf32>, vector<128x32xf32> -> vector<128x32xf32>
    %c96 = arith.constant 96 : index
    %c0_14 = arith.constant 0 : index
    %37 = vector.load %arg3[%c96, %c0_14] : memref<128x128xf32, #tpu.memory_space<vmem>>, vector<32x128xf32>
    %cst_15 = arith.constant dense<0.000000e+00> : vector<128x128xf32>
    %38 = tpu.matmul %36, %37, %cst_15 {dimension_numbers = #tpu.dot_dimension_numbers<[1], [0], [0], [1], [0, 0, 1, 1], [], []>} : vector<128x32xf32>, vector<32x128xf32>, vector<128x128xf32> -> vector<128x128xf32>
    %39 = arith.addf %30, %38 : vector<128x128xf32>
    %c0_16 = arith.constant 0 : index
    %c0_17 = arith.constant 0 : index
    %40 = vector.load %arg4[%c0_16, %c0_17] : memref<1x128xf32, #tpu.memory_space<vmem>>, vector<1x128xf32>
    %41 = vector.broadcast %40 : vector<1x128xf32> to vector<128x128xf32>
    %42 = arith.addf %39, %41 : vector<128x128xf32>
    %cst_18 = arith.constant 0.000000e+00 : f32
    %43 = vector.broadcast %cst_18 : f32 to vector<128x128xf32>
    %44 = arith.maximumf %42, %43 : vector<128x128xf32>
    %c0_19 = arith.constant 0 : index
    %c0_20 = arith.constant 0 : index
    %45 = vector.load %arg5[%c0_19, %c0_20] : memref<128x128xf32, #tpu.memory_space<vmem>>, vector<128x128xf32>
    %cst_21 = arith.constant dense<0.000000e+00> : vector<128x128xf32>
    %46 = tpu.matmul %44, %45, %cst_21 {dimension_numbers = #tpu.dot_dimension_numbers<[1], [0], [0], [1], [0, 0, 1, 1], [], []>} : vector<128x128xf32>, vector<128x128xf32>, vector<128x128xf32> -> vector<128x128xf32>
    %c0_22 = arith.constant 0 : index
    %c0_23 = arith.constant 0 : index
    %47 = vector.load %arg6[%c0_22, %c0_23] : memref<1x128xf32, #tpu.memory_space<vmem>>, vector<1x128xf32>
    %48 = vector.broadcast %47 : vector<1x128xf32> to vector<128x128xf32>
    %49 = arith.addf %46, %48 : vector<128x128xf32>
    %c49_i32 = arith.constant 49 : i32
    %50 = vector.broadcast %c49_i32 : i32 to vector<128x128xi32>
    %51 = arith.cmpi slt, %2, %50 : vector<128x128xi32>
    %cst_24 = arith.constant -1.000000e+30 : f32
    %52 = vector.broadcast %cst_24 : f32 to vector<128x128xf32>
    %53 = arith.select %51, %49, %52 : vector<128x128xi1>, vector<128x128xf32>
    %cst_25 = arith.constant dense<0xFF800000> : vector<128xf32>
    %54 = vector.multi_reduction <maximumf>, %53, %cst_25 [1] : vector<128x128xf32> to vector<128xf32>
    %55 = vector.shape_cast %54 : vector<128xf32> to vector<128x1xf32>
    %56 = vector.broadcast %55 : vector<128x1xf32> to vector<128x128xf32>
    %57 = arith.subf %53, %56 : vector<128x128xf32>
    %58 = math.exp %57 : vector<128x128xf32>
    %cst_26 = arith.constant dense<0.000000e+00> : vector<128xf32>
    %59 = vector.multi_reduction <add>, %58, %cst_26 [1] : vector<128x128xf32> to vector<128xf32>
    %60 = vector.shape_cast %59 : vector<128xf32> to vector<128x1xf32>
    %61 = math.log %60 : vector<128x1xf32>
    %62 = vector.broadcast %61 : vector<128x1xf32> to vector<128x128xf32>
    %63 = arith.subf %57, %62 : vector<128x128xf32>
    %c0_27 = arith.constant 0 : index
    %c0_28 = arith.constant 0 : index
    %64 = vector.load %arg7[%c0_27, %c0_28] : memref<128x128xf32, #tpu.memory_space<vmem>>, vector<128x128xf32>
    tpu.vector_store %arg7[%c0_27, %c0_28], %63 {strides = array<i32>} : memref<128x128xf32, #tpu.memory_space<vmem>>, vector<128x128xf32>,
    return
  }
  func.func @transform_0(%arg0: i32) -> (i32, i32) {
    %c0_i32 = arith.constant 0 : i32
    %c0_i32_0 = arith.constant 0 : i32
    return %arg0, %c0_i32 : i32, i32
  }
  func.func @transform_1(%arg0: i32) -> (i32, i32) {
    %c0_i32 = arith.constant 0 : i32
    %c0_i32_0 = arith.constant 0 : i32
    %c0_i32_1 = arith.constant 0 : i32
    return %c0_i32, %c0_i32_0 : i32, i32
  }
  func.func @transform_2(%arg0: i32) -> (i32, i32) {
    %c0_i32 = arith.constant 0 : i32
    %c0_i32_0 = arith.constant 0 : i32
    %c0_i32_1 = arith.constant 0 : i32
    return %c0_i32, %c0_i32_0 : i32, i32
  }
  func.func @transform_3(%arg0: i32) -> (i32, i32) {
    %c0_i32 = arith.constant 0 : i32
    %c0_i32_0 = arith.constant 0 : i32
    %c0_i32_1 = arith.constant 0 : i32
    return %c0_i32, %c0_i32_0 : i32, i32
  }
  func.func @transform_4(%arg0: i32) -> (i32, i32) {
    %c0_i32 = arith.constant 0 : i32
    %c0_i32_0 = arith.constant 0 : i32
    %c0_i32_1 = arith.constant 0 : i32
    return %c0_i32, %c0_i32_0 : i32, i32
  }
  func.func @transform_5(%arg0: i32) -> (i32, i32) {
    %c0_i32 = arith.constant 0 : i32
    %c0_i32_0 = arith.constant 0 : i32
    %c0_i32_1 = arith.constant 0 : i32
    return %c0_i32, %c0_i32_0 : i32, i32
  }
  func.func @transform_6(%arg0: i32) -> (i32, i32) {
    %c0_i32 = arith.constant 0 : i32
    %c0_i32_0 = arith.constant 0 : i32
    return %arg0, %c0_i32 : i32, i32
  }
}

</mosaic_0001>

<bundles_post_ra>
// kernel: tpu_custom_call.1
= control target key start
LH: loop header
LB: loop body
LE: loop exit
PB: predicated region body
PF: predicated region fallthrough
CT: control target
= control target key end

     0   :  { %11 = vsyncpa [#allocation3], 0  ;;  %s3344_s0 = inlined_call_operand.vmem [shape: s32[256,4], index: 0, kind: input, shape index: {}]   ;;  %s3345_s1 = inlined_call_operand.vmem [shape: f32[128,32], index: 1, kind: input, shape index: {}]   ;;  %s3346_s2 = inlined_call_operand.vmem [shape: f32[128,128], index: 2, kind: input, shape index: {}]   ;;  %s3347_s3 = inlined_call_operand.vmem [shape: f32[1,128], index: 3, kind: input, shape index: {}]   ;;  %s3348_s4 = inlined_call_operand.vmem [shape: f32[128,128], index: 4, kind: input, shape index: {}]   ;;  %s3349_s5 = inlined_call_operand.vmem [shape: f32[1,128], index: 5, kind: input, shape index: {}]   ;;  %s3350_s6 = inlined_call_operand.hbm [shape: f32[256,128], index: 6, kind: output, shape index: {}]  }
   0x1   :  { %13 = vsyncpa [#allocation3 + $0x1], 0  ;;  %s2300_s21 = smov 0   ;;  %s2302_s22 = smov 0  }
   0x2   :  { %s2304_s23 = smov 0   ;;  %s2306_s24 = smov 0  }
   0x3 LB: > { %s2321_s25 = sadd.s32 4294967295, %s2256_s24   ;;  %s1824_s26 = sadd.s32 4294967294, %s2256_s24   ;;  %s2256_s24 = sphi %s2306_s24, %s3356_s24   ;;  %s2252_s23 = sphi %s2304_s23, %s3355_s23   ;;  %s2248_s22 = sphi %s2302_s22, %s3354_s22   ;;  %s2244_s21 = sphi %s2300_s21, %s3353_s21  }
   0x4   : > { %s2325_s27 = sadd.s32 1, %s2256_s24   ;;  %s157_s28 = sadd.s32 1, %s2252_s23 }
   0x5   : > { %s154_s29 = ssub.s32 %s2256_s24, %s2325_s27  ;;  %p167_p0 = scmp.ne.s32.totalorder %s2252_s23, %s2248_s22 }
   0x6   : > { %p155_p1 = scmp.eq.s32.totalorder %s154_s29, 0  ;;  %p168_p2 = scmp.eq.s32.totalorder %s2321_s25, 1 }
   0x7   : > { %p173_p3 = scmp.ne.s32.totalorder %s2248_s22, %s2244_s21  ;;  %p174_p4 = scmp.eq.s32.totalorder %s1824_s26, 1 }
   0x8   : > { %s2336_s30 = scalar_select %p155_p1, %s2252_s23, %s157_s28  }
   0x9   : > { %p2338_p5 = por %p168_p2, %p167_p0  ;;  %p2342_p6 = por %p174_p4, %p173_p3 }
   0xa   : > { %p1827_p7 = scmp.ge.s32.totalorder %s2256_s24, 1  ;;  %p216_p8 = scmp.lt.s32.totalorder %s2256_s24, 3 }
   0xc   : > { %p217_p9 = pnand %p1827_p7, %p216_p8 }
   0xd   : > { %s1829_s9 = sshll.u32 (!%p217_p9), %s2321_s25, 4  ;;  %s2028_s12 = sshll.u32 (!%p217_p9), %s2321_s25, 7 }
   0xe   : > { %220 = sbr.rel (%p217_p9) target bundleno = 1174 (0x496), region = 44  ;;  %p247_p10 = scmp.lt.s32.totalorder (!%p217_p9), %s1829_s9, 31 }
   0xf   : > { %s1758_s16 = scalar_lea.hbm (!%p217_p9), %s3350_s6, %s2028_s12  ;;  %s2214_s29 = scalar_lea.hbm (!%p217_p9), %s3350_s6, 256 }
  0x10   : > { %s1761_s18 = sshll.u32 (!%p217_p9), %s1758_s16, 4  ;;  %s1762_s18 = int_to_ptr.hbm [resolvable:$true] %s1761_s18 }
  0x11   : > { %s2208_s19 = sshra.s32 (!%p217_p9), %s1762_s18, 4  ;;  %s2209_s19 = int_to_ptr.hbm [resolvable:$true] %s2208_s19 }
  0x12   : > { %s2210_s20 = scalar_lea.hbm (!%p217_p9), %s2209_s19, 128  ;;  %p2215_p0 = scmp.lt.s32.totalorder (!%p217_p9), %s2209_s19, %s3350_s6 }
  0x13   : > { %v2258_v0 = vmov 1   ;;  %s3358_s9 = smov (!%p247_p10, %s1829_s9), 31  ;;  %v2405_v13 = vld [vmem:[%s3345_s1 + $0x78] sm:$0xff]  ;;  %v2410_v14 = vld [vmem:[%s3345_s1 + $0x70] sm:$0xff]  ;;  %v2421_v16 = vld [vmem:[%s3345_s1 + $0x68] sm:$0xff]  ;;  %v2259_v18 = vmov 0   ;;  %v285_v34 = vlaneseq  ;;  %p2211_p11 = scmp.ne.s32.totalorder %s2209_s19, %s2210_s20 }
  0x14   : > { %2100 = vset.pattern.permute.xlu1 %v2258_v0  ;;  %2099 = vset.pattern.permute.xlu0 %v2258_v0  ;;  %s1830_s10 = sshll.u32 %s3358_s9, 3  ;;  %v2431_v19 = vld [vmem:[%s3345_s1 + $0x60] sm:$0xff]  ;;  %v2439_v20 = vld [vmem:[%s3345_s1 + $0x58] sm:$0xff]  ;;  %v2446_v21 = vld [vmem:[%s3345_s1 + $0x50] sm:$0xff]  ;;  %v2260_v39 = vmov 1.0   ;;  %v2261_v60 = vmov 2   ;;  %p2216_p1 = scmp.lt.s32.totalorder %s2214_s29, %s2210_s20 }
  0x15   : > { %2101 = vset.pattern.permute.xlu2 %v2258_v0  ;;  %s2352_s13 = scalar_lea.vmem %s3344_s0, %s1830_s10  ;;  %548 = vmatpush.msra.mxu1 %v2405_v13  ;;  %v2458_v23 = vld [vmem:[%s3345_s1 + $0x48] sm:$0xff]  ;;  %v2466_v24 = vld [vmem:[%s3345_s1 + $0x40] sm:$0xff]  ;;  %v2473_v25 = vld [vmem:[%s3345_s1 + $0x38] sm:$0xff]  ;;  %v2559_v36 = vand.u32 127, %v285_v34  ;;  %s243_s9 = sand.u32 1, %s2248_s22  }
  0x16   : > { %v2355_v1 = vld [vmem:[%s2352_s13 + $0x10] sm:$0xff]  ;;  %v2358_v2 = vld [vmem:[%s2352_s13] sm:$0xff]  ;;  %v2367_v4 = vld [vmem:[%s2352_s13 + $0x18] sm:$0xff]  ;;  %383 = vmatpush.msra.mxu0 %v2405_v13  ;;  %s1828_s10 = sshll.u32 %s243_s9, 7  ;;  %s1747_s25 = scalar_lea.sflag [#allocation3], %s243_s9 }
  0x17   : > { %459 = vperm.xlu1 %2100, %v2355_v1   ;;  %453 = vperm.xlu0 %2099, %v2358_v2   ;;  %v2363_v3 = vld [vmem:[%s2352_s13 + $0x20] sm:$0xff]  ;;  %v2370_v5 = vld [vmem:[%s2352_s13 + $0x8] sm:$0xff]  ;;  %v2379_v7 = vld [vmem:[%s2352_s13 + $0x38] sm:$0xff]  ;;  %s3277_s11 = scalar_lea.vmem [#allocation2], %s1828_s10  ;;  %p2212_p12 = pnand %p2211_p11, %p2338_p5 }
  0x18   : > { %465 = vperm.xlu2 %2101, %v2363_v3   ;;  %v2373_v6 = vld [vmem:[%s2352_s13 + $0x28] sm:$0xff]  ;;  %v2382_v8 = vld [vmem:[%s2352_s13 + $0x30] sm:$0xff]  ;;  %v2385_v9 = vld [vmem:[%s2352_s13 + $0x40] sm:$0xff]  ;;  %549 = vmatpush.msra.mxu1 %v2410_v14  ;;  %s1759_s17 = sshll.u32 %s3277_s11, 4  ;;  %p2217_p2 = por %p2216_p1, %p2215_p0  ;;  %s1760_s17 = int_to_ptr.vmem [resolvable:$true] %s1759_s17 }
  0x19   : > { %v2391_v10 = vld [vmem:[%s2352_s13 + $0x50] sm:$0xff]  ;;  %v2394_v11 = vld [vmem:[%s2352_s13 + $0x48] sm:$0xff]  ;;  %v2397_v12 = vld [vmem:[%s2352_s13 + $0x58] sm:$0xff]  ;;  %384 = vmatpush.msra.mxu0 %v2410_v14  ;;  %p2213_p13 = pneg %p2212_p12 }
  0x1a   : > { %v2415_v15 = vld [vmem:[%s2352_s13 + $0x60] sm:$0xff]  ;;  %v2425_v17 = vld [vmem:[%s2352_s13 + $0x68] sm:$0xff]  ;;  %550 = vmatpush.msra.mxu1 %v2421_v16  ;;  %v2452_v22 = vld [vmem:[%s2352_s13 + $0x70] sm:$0xff] }
  0x1b   : > { %385 = vmatpush.msra.mxu0 %v2421_v16  ;;  %v2480_v26 = vld [vmem:[%s3345_s1 + $0x30] sm:$0xff]  ;;  %v2484_v27 = vld [vmem:[%s2352_s13 + $0x78] sm:$0xff]  ;;  %v2490_v28 = vld [vmem:[%s3345_s1 + $0x28] sm:$0xff]  ;;  %p2218_p3 = pnand %p2217_p2, %p2213_p13 }
  0x1c   : > { %551 = vmatpush.msra.mxu1 %v2431_v19  ;;  %v2499_v29 = vld [vmem:[%s3345_s1 + $0x20] sm:$0xff]  ;;  %v2507_v30 = vld [vmem:[%s3345_s1 + $0x18] sm:$0xff]  ;;  %v2514_v31 = vld [vmem:[%s3345_s1 + $0x10] sm:$0xff] }
  0x1d   : > { %386 = vmatpush.msra.mxu0 %v2431_v19  ;;  %v2524_v32 = vld [vmem:[%s3345_s1 + $0x8] sm:$0xff]  ;;  %v2540_v33 = vld [vmem:[%s3345_s1] sm:$0xff]  ;;  %v616_v59 = vld [vmem:[%s3346_s2 + $0x38] sm:$0xff] }
  0x1e   : > { %552 = vmatpush.msra.mxu1 %v2439_v20  ;;  %2029 = vmatpush.msra.mxu2 %v616_v59 }
  0x1f   : > { %462 = vperm.xlu1 %2100, %v2367_v4   ;;  %456 = vperm.xlu0 %2099, %v2370_v5  }
  0x20   : > { %468 = vperm.xlu2 %2101, %v2373_v6   ;;  %387 = vmatpush.msra.mxu0 %v2439_v20 }
  0x21   : > { %553 = vmatpush.msra.mxu1 %v2446_v21  ;;  %2030 = vmatpush.msra.mxu3 %v616_v59 }
  0x22   : > { %388 = vmatpush.msra.mxu0 %v2446_v21 }
  0x23   : > { %554 = vmatpush.msra.mxu1 %v2458_v23 }
  0x24   : > { %389 = vmatpush.msra.mxu0 %v2458_v23 }
  0x25   : > { %555 = vmatpush.msra.mxu1 %v2466_v24 }
  0x26   : > { %390 = vmatpush.msra.mxu0 %v2466_v24 }
  0x27   : > { %474 = vperm.xlu1 %2100, %v2379_v7   ;;  %471 = vperm.xlu0 %2099, %v2382_v8  }
  0x28   : > { %477 = vperm.xlu2 %2101, %v2385_v9   ;;  %556 = vmatpush.msra.mxu1 %v2473_v25 }
  0x29   : > { %391 = vmatpush.msra.mxu0 %v2473_v25 }
  0x2a   : > { %557 = vmatpush.msra.mxu1 %v2480_v26 }
  0x2b   : > { %392 = vmatpush.msra.mxu0 %v2480_v26 }
  0x2c   : > { %558 = vmatpush.msra.mxu1 %v2490_v28 }
  0x2d   : > { %393 = vmatpush.msra.mxu0 %v2490_v28 }
  0x2e   : > { %559 = vmatpush.msra.mxu1 %v2499_v29 }
  0x2f   : > { %483 = vperm.xlu1 %2100, %v2391_v10   ;;  %480 = vperm.xlu0 %2099, %v2394_v11  }
  0x30   : > { %486 = vperm.xlu2 %2101, %v2397_v12   ;;  %394 = vmatpush.msra.mxu0 %v2499_v29 }
  0x31   : > { %560 = vmatpush.msra.mxu1 %v2507_v30 }
  0x32   : > { %395 = vmatpush.msra.mxu0 %v2507_v30 }
  0x33   : > { %561 = vmatpush.msra.mxu1 %v2514_v31 }
  0x34   : > { %396 = vmatpush.msra.mxu0 %v2514_v31 }
  0x35   : > { %562 = vmatpush.msra.mxu1 %v2524_v32 }
  0x36   : > { %397 = vmatpush.msra.mxu0 %v2524_v32 }
  0x37   : > { %2102 = vset.pattern.permute.xlu1 %v2259_v18  ;;  %489 = vperm.xlu0 %2099, %v2415_v15  }
  0x38   : > { %288 = vperm.xlu1 %2102, %v2358_v2   ;;  %492 = vperm.xlu2 %2101, %v2425_v17  }
  0x39   : > { %563 = vmatpush.msra.mxu1 %v2540_v33  ;;  %398 = vmatpush.msra.mxu0 %v2540_v33 }
  0x3b   : > { %2037 = vmatpush.msrb.mxu1 %v2405_v13  ;;  %678 = vmatpush.msrb.mxu0 %v616_v59 }
  0x3d   : > { %2038 = vmatpush.msrb.mxu1 %v2410_v14 }
  0x3f   : > { %2103 = vset.pattern.permute.xlu0 %v2259_v18  ;;  %2039 = vmatpush.msrb.mxu1 %v2421_v16 }
  0x40   : > { %291 = vperm.xlu0 %2103, %v2370_v5   ;;  %2104 = vset.pattern.permute.xlu1 %v2258_v0 }
  0x41   : > { %495 = vperm.xlu1 %2104, %v2452_v22   ;;  %2105 = vset.pattern.permute.xlu2 %v2259_v18 }
  0x42   : > { %294 = vperm.xlu2 %2105, %v2355_v1   ;;  %2040 = vmatpush.msrb.mxu1 %v2431_v19 }
  0x44   : > { %2041 = vmatpush.msrb.mxu1 %v2439_v20 }
  0x46   : > { %2042 = vmatpush.msrb.mxu1 %v2446_v21 }
  0x48   : > { %300 = vperm.xlu0 %2103, %v2363_v3   ;;  %2043 = vmatpush.msrb.mxu1 %v2458_v23 }
  0x49   : > { %498 = vperm.xlu1 %2104, %v2484_v27  }
  0x4a   : > { %297 = vperm.xlu2 %2105, %v2367_v4   ;;  %2044 = vmatpush.msrb.mxu1 %v2466_v24 }
  0x4c   : > { %2045 = vmatpush.msrb.mxu1 %v2473_v25 }
  0x4e   : > { %2046 = vmatpush.msrb.mxu1 %v2480_v26 }
  0x50   : > { %309 = vperm.xlu0 %2103, %v2379_v7   ;;  %2047 = vmatpush.msrb.mxu1 %v2490_v28 }
  0x51   : > { %2106 = vset.pattern.permute.xlu1 %v2259_v18  ;;  %v615_v18 = vld [vmem:[%s3346_s2 + $0x30] sm:$0xff] }
  0x52   : > { %303 = vperm.xlu1 %2106, %v2373_v6   ;;  %306 = vperm.xlu2 %2105, %v2382_v8  }
  0x53   : > { %2048 = vmatpush.msrb.mxu1 %v2499_v29  ;;  %679 = vmatpush.msrb.mxu0 %v615_v18 }
  0x54   : > { %2031 = vmatpush.msra.mxu2 %v615_v18  ;;  %2032 = vmatpush.msra.mxu3 %v615_v18 }
  0x55   : > { %2049 = vmatpush.msrb.mxu1 %v2507_v30 }
  0x57   : > { %2050 = vmatpush.msrb.mxu1 %v2514_v31 }
  0x58   : > { %318 = vperm.xlu0 %2103, %v2391_v10  }
  0x59   : > { %2051 = vmatpush.msrb.mxu1 %v2524_v32 }
  0x5a   : > { %312 = vperm.xlu1 %2106, %v2385_v9   ;;  %315 = vperm.xlu2 %2105, %v2394_v11  }
  0x5b   : > { %2052 = vmatpush.msrb.mxu1 %v2540_v33 }
  0x60   : > { %327 = vperm.xlu0 %2103, %v2425_v17  }
  0x62   : > { %321 = vperm.xlu1 %2106, %v2397_v12   ;;  %324 = vperm.xlu2 %2105, %v2415_v15  }
  0x68   : > { %2107 = vset.pattern.permute.xlu0 %v2261_v60 }
  0x69   : > { %845 = vperm.xlu0 %2107, %v2358_v2  }
  0x6a   : > { %333 = vperm.xlu2 %2105, %v2484_v27   ;;  %330 = vperm.xlu1 %2106, %v2452_v22  }
  0x71   : > { %854 = vperm.xlu0 %2107, %v2367_v4  }
  0x72   : > { %v466_v35 = vpop.permute.xlu2 %465  ;;  %2108 = vset.pattern.permute.xlu1 %v2261_v60 }
  0x73   : > { %vm504_vm4 = vcmp.eq.s32.totalorder %v2559_v36, %v466_v35  ;;  %848 = vperm.xlu1 %2108, %v2370_v5  }
  0x7a   : > { %v469_v40 = vpop.permute.xlu2 %468 }
  0x7b   : > { %vm505_vm6 = vcmp.eq.s32.totalorder %v2559_v36, %v469_v40  ;;  %851 = vperm.xlu1 %2108, %v2355_v1   ;;  %v613_v40 = vld [vmem:[%s3346_s2 + $0x20] sm:$0xff] }
  0x82   : > { %v478_v43 = vpop.permute.xlu2 %477 }
  0x83   : > { %vm508_vm13 = vcmp.eq.s32.totalorder %v2559_v36, %v478_v43  ;;  %v1008_v43 = vld [vmem:[%s3346_s2 + $0x58] sm:$0xff] }
  0x89   : > { %v460_v37 = vpop.permute.xlu1 %459  ;;  %v454_v38 = vpop.permute.xlu0 %453 }
  0x8a   : > { %vm500_vm0 = vcmp.eq.s32.totalorder %v2559_v36, %v454_v38  ;;  %vm502_vm2 = vcmp.eq.s32.totalorder %v2559_v36, %v460_v37  ;;  %v487_v48 = vpop.permute.xlu2 %486  ;;  %v614_v37 = vld [vmem:[%s3346_s2 + $0x28] sm:$0xff]  ;;  %v2262_v38 = vmov 3  }
  0x8b   : > { %1879 = vmatmul.msk.f32.vlgmr.msra.gmra.mxu1 %vm500_vm0, %v2260_v39  ;;  %2033 = vmatpush.msra.mxu2 %v614_v37 }
  0x8c   : > { %2110 = vset.pattern.permute.xlu1 %v2262_v38  ;;  %680 = vmatpush.msrb.mxu0 %v614_v37 }
  0x8d   : > { %1145 = vperm.xlu1 %2110, %v2355_v1   ;;  %2109 = vset.pattern.permute.xlu2 %v2262_v38 }
  0x8e   : > { %2112 = vset.pattern.permute.xlu0 %v2262_v38  ;;  %2035 = vmatpush.msra.mxu2 %v613_v40 }
  0x8f   : > { %681 = vmatpush.msrb.mxu0 %v613_v40  ;;  %1139 = vperm.xlu2 %2109, %v2358_v2  }
  0x90   : > { %1148 = vperm.xlu0 %2112, %v2367_v4   ;;  %940 = vmatpush.msrb.mxu2 %v2405_v13 }
  0x91   : > { %v463_v41 = vpop.permute.xlu1 %462  ;;  %v457_v42 = vpop.permute.xlu0 %456  ;;  %2034 = vmatpush.msra.mxu3 %v614_v37 }
  0x92   : > { %vm501_vm1 = vcmp.eq.s32.totalorder %v2559_v36, %v457_v42  ;;  %vm503_vm3 = vcmp.eq.s32.totalorder %v2559_v36, %v463_v41  ;;  %v2575_v51 = vpop.permute.xlu2 %492  ;;  %941 = vmatpush.msrb.mxu2 %v2410_v14 }
  0x93   : > { %1880 = vmatmul.msk.f32.gmra.mxu1 %vm501_vm1, %v2260_v39  ;;  %2036 = vmatpush.msra.mxu3 %v613_v40 }
  0x94   : > { %942 = vmatpush.msrb.mxu2 %v2421_v16 }
  0x95   : > { %2113 = vset.pattern.permute.xlu1 %v2261_v60 }
  0x96   : > { %860 = vperm.xlu1 %2113, %v2373_v6   ;;  %943 = vmatpush.msrb.mxu2 %v2431_v19 }
  0x97   : > { %1142 = vperm.xlu2 %2109, %v2370_v5  }
  0x98   : > { %2115 = vset.pattern.permute.xlu0 %v2261_v60  ;;  %944 = vmatpush.msrb.mxu2 %v2439_v20 }
  0x99   : > { %v475_v44 = vpop.permute.xlu1 %474  ;;  %v472_v45 = vpop.permute.xlu0 %471  ;;  %866 = vperm.xlu0 %2115, %v2379_v7  }
  0x9a   : > { %vm506_vm9 = vcmp.eq.s32.totalorder %v2559_v36, %v472_v45  ;;  %vm507_vm11 = vcmp.eq.s32.totalorder %v2559_v36, %v475_v44  ;;  %945 = vmatpush.msrb.mxu2 %v2446_v21 }
  0x9b   : > { %1881 = vmatmul.msk.f32.gmra.mxu1 %vm502_vm2, %v2260_v39 }
  0x9c   : > { %v295_v53 = vpop.permute.xlu2 %294  ;;  %946 = vmatpush.msrb.mxu2 %v2458_v23 }
  0x9d   : > { %vm337_vm8 = vcmp.eq.s32.totalorder %v2559_v36, %v295_v53 }
  0x9e   : > { %863 = vperm.xlu1 %2113, %v2382_v8   ;;  %947 = vmatpush.msrb.mxu2 %v2466_v24 }
  0x9f   : > { %2111 = vset.pattern.permute.xlu2 %v2261_v60 }
  0xa0   : > { %857 = vperm.xlu2 %2111, %v2363_v3   ;;  %948 = vmatpush.msrb.mxu2 %v2473_v25 }
  0xa1   : > { %v484_v46 = vpop.permute.xlu1 %483  ;;  %v481_v47 = vpop.permute.xlu0 %480  ;;  %2118 = vset.pattern.permute.xlu0 %v2262_v38 }
  0xa2   : > { %vm509_vm15 = vcmp.eq.s32.totalorder %v2559_v36, %v481_v47  ;;  %vm510_vm1 = vcmp.eq.s32.totalorder %v2559_v36, %v484_v46  ;;  %1163 = vperm.xlu0 %2118, %v2385_v9   ;;  %949 = vmatpush.msrb.mxu2 %v2480_v26 }
  0xa3   : > { %1882 = vmatmul.msk.f32.gmra.mxu1 %vm503_vm3, %v2260_v39  ;;  %vm511_vm3 = vcmp.eq.s32.totalorder %v2559_v36, %v487_v48 }
  0xa4   : > { %v298_v55 = vpop.permute.xlu2 %297  ;;  %950 = vmatpush.msrb.mxu2 %v2490_v28 }
  0xa5   : > { %vm338_vm10 = vcmp.eq.s32.totalorder %v2559_v36, %v298_v55 }
  0xa6   : > { %2116 = vset.pattern.permute.xlu1 %v2262_v38  ;;  %951 = vmatpush.msrb.mxu2 %v2499_v29 }
  0xa7   : > { %1157 = vperm.xlu1 %2116, %v2382_v8  }
  0xa8   : > { %2114 = vset.pattern.permute.xlu2 %v2262_v38  ;;  %952 = vmatpush.msrb.mxu2 %v2507_v30 }
  0xa9   : > { %v490_v49 = vpop.permute.xlu0 %489  ;;  %1151 = vperm.xlu2 %2114, %v2363_v3  }
  0xaa   : > { %v289_v50 = vpop.permute.xlu1 %288  ;;  %2121 = vset.pattern.permute.xlu0 %v2261_v60  ;;  %953 = vmatpush.msrb.mxu2 %v2514_v31 }
  0xab   : > { %vm335_vm5 = vcmp.eq.s32.totalorder %v2559_v36, %v289_v50  ;;  %1883 = vmatmul.msk.f32.gmra.mxu1 %vm504_vm4, %v2260_v39  ;;  %881 = vperm.xlu0 %2121, %v2415_v15  }
  0xac   : > { %1847 = vmatmul.msk.f32.vlgmr.msra.gmra.mxu0 %vm335_vm5, %v2260_v39  ;;  %v307_v61 = vpop.permute.xlu2 %306  ;;  %vm512_vm5 = vcmp.eq.s32.totalorder %v2559_v36, %v490_v49  ;;  %954 = vmatpush.msrb.mxu2 %v2524_v32 }
  0xad   : > { %vm341_vm0 = vcmp.eq.s32.totalorder %v2559_v36, %v307_v61  ;;  %1234 = vmatpush.msra.mxu0 %v2405_v13 }
  0xae   : > { %955 = vmatpush.msrb.mxu2 %v2540_v33 }
  0xaf   : > { %1235 = vmatpush.msra.mxu0 %v2410_v14  ;;  %1160 = vperm.xlu1 %2116, %v2379_v7  }
  0xb1   : > { %1236 = vmatpush.msra.mxu0 %v2421_v16  ;;  %1154 = vperm.xlu2 %2114, %v2373_v6  }
  0xb2   : > { %v292_v52 = vpop.permute.xlu0 %291 }
  0xb3   : > { %vm336_vm7 = vcmp.eq.s32.totalorder %v2559_v36, %v292_v52  ;;  %1884 = vmatmul.msk.f32.gmra.mxu1 %vm505_vm6, %v2260_v39  ;;  %v496_v54 = vpop.permute.xlu1 %495  ;;  %1237 = vmatpush.msra.mxu0 %v2431_v19  ;;  %v451_v19 = vld [vmem:[%s3346_s2 + $0x18] sm:$0xff] }
  0xb4   : > { %1848 = vmatmul.msk.f32.gmra.mxu0 %vm336_vm7, %v2260_v39  ;;  %v316_v0 = vpop.permute.xlu2 %315  ;;  %vm513_vm7 = vcmp.eq.s32.totalorder %v2559_v36, %v2575_v51  ;;  %2124 = vset.pattern.permute.xlu0 %v2262_v38 }
  0xb5   : > { %vm344_vm6 = vcmp.eq.s32.totalorder %v2559_v36, %v316_v0  ;;  %1238 = vmatpush.msra.mxu0 %v2439_v20  ;;  %1178 = vperm.xlu0 %2124, %v2425_v17  }
  0xb6   : > { %791 = vmatpush.msrb.mxu3 %v451_v19  ;;  %v1005_v19 = vld [vmem:[%s3346_s2 + $0x40] sm:$0xff] }
  0xb7   : > { %1239 = vmatpush.msra.mxu0 %v2446_v21  ;;  %2119 = vset.pattern.permute.xlu1 %v2261_v60 }
  0xb8   : > { %875 = vperm.xlu1 %2119, %v2391_v10  }
  0xb9   : > { %1240 = vmatpush.msra.mxu0 %v2458_v23  ;;  %2117 = vset.pattern.permute.xlu2 %v2261_v60 }
  0xba   : > { %v301_v57 = vpop.permute.xlu0 %300  ;;  %869 = vperm.xlu2 %2117, %v2385_v9   ;;  %v450_v9 = vld [vmem:[%s3346_s2 + $0x10] sm:$0xff] }
  0xbb   : > { %1885 = vmatmul.msk.f32.gmra.mxu1 %vm506_vm9, %v2260_v39  ;;  %v499_v56 = vpop.permute.xlu1 %498  ;;  %vm339_vm12 = vcmp.eq.s32.totalorder %v2559_v36, %v301_v57  ;;  %1241 = vmatpush.msra.mxu0 %v2466_v24 }
  0xbc   : > { %1849 = vmatmul.msk.f32.gmra.mxu0 %vm337_vm8, %v2260_v39  ;;  %vm514_vm8 = vcmp.eq.s32.totalorder %v2559_v36, %v496_v54  ;;  %v325_v42 = vpop.permute.xlu2 %324  ;;  %792 = vmatpush.msrb.mxu3 %v450_v9 }
  0xbd   : > { %1242 = vmatpush.msra.mxu0 %v2473_v25 }
  0xbf   : > { %1243 = vmatpush.msra.mxu0 %v2480_v26 }
  0xc0   : > { %878 = vperm.xlu1 %2119, %v2397_v12  }
  0xc1   : > { %1244 = vmatpush.msra.mxu0 %v2490_v28 }
  0xc2   : > { %v310_v62 = vpop.permute.xlu0 %309  ;;  %872 = vperm.xlu2 %2117, %v2394_v11  }
  0xc3   : > { %1886 = vmatmul.msk.f32.gmra.mxu1 %vm507_vm11, %v2260_v39  ;;  %vm342_vm2 = vcmp.eq.s32.totalorder %v2559_v36, %v310_v62  ;;  %vm515_vm11 = vcmp.eq.s32.totalorder %v2559_v36, %v499_v56  ;;  %1245 = vmatpush.msra.mxu0 %v2499_v29  ;;  %v1007_v56 = vld [vmem:[%s3346_s2 + $0x50] sm:$0xff] }
  0xc4   : > { %1850 = vmatmul.msk.f32.gmra.mxu0 %vm338_vm10, %v2260_v39  ;;  %v304_v58 = vpop.permute.xlu1 %303  ;;  %v334_v13 = vpop.permute.xlu2 %333 }
  0xc5   : > { %vm340_vm14 = vcmp.eq.s32.totalorder %v2559_v36, %v304_v58  ;;  %1246 = vmatpush.msra.mxu0 %v2507_v30  ;;  %v448_v30 = vld [vmem:[%s3346_s2] sm:$0xff] }
  0xc7   : > { %1247 = vmatpush.msra.mxu0 %v2514_v31 }
  0xc8   : > { %2122 = vset.pattern.permute.xlu1 %v2262_v38 }
  0xc9   : > { %1248 = vmatpush.msra.mxu0 %v2524_v32  ;;  %1172 = vperm.xlu1 %2122, %v2397_v12   ;;  %v449_v12 = vld [vmem:[%s3346_s2 + $0x8] sm:$0xff] }
  0xca   : > { %v319_v34 = vpop.permute.xlu0 %318  ;;  %2120 = vset.pattern.permute.xlu2 %v2262_v38  ;;  %793 = vmatpush.msrb.mxu3 %v449_v12 }
  0xcb   : > { %1887 = vmatmul.msk.f32.gmra.mxu1 %vm508_vm13, %v2260_v39  ;;  %vm345_vm9 = vcmp.eq.s32.totalorder %v2559_v36, %v319_v34  ;;  %1249 = vmatpush.msra.mxu0 %v2540_v33 }
  0xcc   : > { %1851 = vmatmul.msk.f32.gmra.mxu0 %vm339_vm12, %v2260_v39  ;;  %v313_v63 = vpop.permute.xlu1 %312  ;;  %vm347_vm12 = vcmp.eq.s32.totalorder %v2559_v36, %v325_v42  ;;  %1166 = vperm.xlu2 %2120, %v2394_v11  }
  0xcd   : > { %vm343_vm4 = vcmp.eq.s32.totalorder %v2559_v36, %v313_v63  ;;  %794 = vmatpush.msrb.mxu3 %v448_v30 }
  0xd1   : > { %1175 = vperm.xlu1 %2122, %v2415_v15  }
  0xd2   : > { %v328_v1 = vpop.permute.xlu0 %327 }
  0xd3   : > { %1888 = vmatmul.msk.f32.gmra.mxu1 %vm509_vm15, %v2260_v39  ;;  %vm348_vm13 = vcmp.eq.s32.totalorder %v2559_v36, %v328_v1  ;;  %vm350_vm15 = vcmp.eq.s32.totalorder %v2559_v36, %v334_v13 }
  0xd4   : > { %1852 = vmatmul.msk.f32.gmra.mxu0 %vm340_vm14, %v2260_v39  ;;  %v322_v35 = vpop.permute.xlu1 %321  ;;  %1169 = vperm.xlu2 %2120, %v2391_v10  }
  0xd5   : > { %vm346_vm10 = vcmp.eq.s32.totalorder %v2559_v36, %v322_v35  ;;  %v1006_v35 = vld [vmem:[%s3346_s2 + $0x48] sm:$0xff] }
  0xd9   : > { %2125 = vset.pattern.permute.xlu1 %v2261_v60 }
  0xda   : > { %890 = vperm.xlu1 %2125, %v2484_v27  }
  0xdb   : > { %1889 = vmatmul.msk.f32.gmra.mxu1 %vm510_vm1, %v2260_v39  ;;  %v846_v11 = vpop.permute.xlu0 %845 }
  0xdc   : > { %1853 = vmatmul.msk.f32.gmra.mxu0 %vm341_vm0, %v2260_v39  ;;  %v331_v4 = vpop.permute.xlu1 %330  ;;  %vm617_vm0 = vcmask 261120   ;;  %2123 = vset.pattern.permute.xlu2 %v2261_v60  ;;  %vm892_vm1 = vcmp.eq.s32.totalorder %v2559_v36, %v846_v11 }
  0xdd   : > { %vm349_vm14 = vcmp.eq.s32.totalorder %v2559_v36, %v331_v4  ;;  %884 = vperm.xlu2 %2123, %v2425_v17  }
  0xe2   : > { %2127 = vset.pattern.permute.xlu1 %v2262_v38 }
  0xe3   : > { %1890 = vmatmul.msk.f32.gmra.mxu1 %vm511_vm3, %v2260_v39  ;;  %1184 = vperm.xlu1 %2127, %v2484_v27   ;;  %v855_v44 = vpop.permute.xlu0 %854 }
  0xe4   : > { %1854 = vmatmul.msk.f32.gmra.mxu0 %vm342_vm2, %v2260_v39 }
  0xe5   : > { %v849_v15 = vpop.permute.xlu1 %848  ;;  %887 = vperm.xlu2 %2123, %v2452_v22  }
  0xe6   : > { %vm893_vm2 = vcmp.eq.s32.totalorder %v2559_v36, %v849_v15  ;;  %v1301_v15 = vld [vmem:[%s3346_s2 + $0x70] sm:$0xff] }
  0xe9   : > { %v1140_v33 = vpop.permute.xlu2 %1139 }
  0xea   : > { %vm1186_vm3 = vcmp.eq.s32.totalorder %v2559_v36, %v1140_v33 }
  0xeb   : > { %1891 = vmatmul.msk.f32.gmra.mxu1 %vm512_vm5, %v2260_v39 }
  0xec   : > { %1855 = vmatmul.msk.f32.gmra.mxu0 %vm343_vm4, %v2260_v39 }
  0xed   : > { %v852_v31 = vpop.permute.xlu1 %851  ;;  %2126 = vset.pattern.permute.xlu2 %v2262_v38 }
  0xee   : > { %vm894_vm4 = vcmp.eq.s32.totalorder %v2559_v36, %v852_v31  ;;  %1181 = vperm.xlu2 %2126, %v2452_v22   ;;  %v1299_v31 = vld [vmem:[%s3346_s2 + $0x60] sm:$0xff] }
  0xf1   : > { %v1143_v45 = vpop.permute.xlu2 %1142 }
  0xf2   : > { %vm1187_vm5 = vcmp.eq.s32.totalorder %v2559_v36, %v1143_v45 }
  0xf3   : > { %1892 = vmatmul.msk.f32.gmra.mxu1 %vm513_vm7, %v2260_v39 }
  0xf4   : > { %1856 = vmatmul.msk.f32.gmra.mxu0 %vm344_vm6, %v2260_v39  ;;  %vm895_vm6 = vcmp.eq.s32.totalorder %v2559_v36, %v855_v44  ;;  %v1483_v44 = vld [vmem:[%s3348_s4 + $0x78] sm:$0xff] }
  0xfa   : > { %v858_v50 = vpop.permute.xlu2 %857 }
  0xfb   : > { %1893 = vmatmul.msk.f32.gmra.mxu1 %vm514_vm8, %v2260_v39  ;;  %vm896_vm8 = vcmp.eq.s32.totalorder %v2559_v36, %v858_v50 }
  0xfc   : > { %1857 = vmatmul.msk.f32.gmra.mxu0 %vm345_vm9, %v2260_v39 }
  0xff   : > { %v1146_v49 = vpop.permute.xlu1 %1145 }
 0x100   : > { %vm1188_vm7 = vcmp.eq.s32.totalorder %v2559_v36, %v1146_v49 }
 0x102   : > { %v1149_v52 = vpop.permute.xlu0 %1148 }
 0x103   : > { %1894 = vmatmul.msk.f32.gmra.mxu1 %vm515_vm11, %v2260_v39  ;;  %vm1189_vm9 = vcmp.eq.s32.totalorder %v2559_v36, %v1149_v52  ;;  %v1152_v55 = vpop.permute.xlu2 %1151 }
 0x104   : > { %1858 = vmatmul.msk.f32.gmra.mxu0 %vm346_vm10, %v2260_v39  ;;  %vm1190_vm11 = vcmp.eq.s32.totalorder %v2559_v36, %v1152_v55  ;;  %v1480_v55 = vld [vmem:[%s3348_s4 + $0x60] sm:$0xff] }
 0x108   : > { %v2645_v41 = vpop.f32.mrf.mxu1  ;;  %v861_v54 = vpop.permute.xlu1 %860 }
 0x109   : > { %vm897_vm10 = vcmp.eq.s32.totalorder %v2559_v36, %v861_v54 }
 0x10b   : > { %v1155_v59 = vpop.permute.xlu2 %1154  ;;  %v867_v60 = vpop.permute.xlu0 %866 }
 0x10c   : > { %1859 = vmatmul.msk.f32.gmra.mxu0 %vm347_vm12, %v2260_v39 }
 0x110   : > { %v2659_v2 = vpop.f32.mrf.mxu1  ;;  %v864_v57 = vpop.permute.xlu1 %863 }
 0x111   : > { %vm898_vm12 = vcmp.eq.s32.totalorder %v2559_v36, %v864_v57 }
 0x114   : > { %1860 = vmatmul.msk.f32.gmra.mxu0 %vm348_vm13, %v2260_v39  ;;  %vm1191_vm13 = vcmp.eq.s32.totalorder %v2559_v36, %v1155_v59  ;;  %v870_v63 = vpop.permute.xlu2 %869  ;;  %v1164_v37 = vpop.permute.xlu0 %1163  ;;  %v1479_v59 = vld [vmem:[%s3348_s4 + $0x58] sm:$0xff] }
 0x118   : > { %v571_v5 = vpop.f32.mrf.mxu1 }
 0x119   : > { %v1158_v61 = vpop.permute.xlu1 %1157 }
 0x11c   : > { %1861 = vmatmul.msk.f32.gmra.mxu0 %vm349_vm14, %v2260_v39  ;;  %vm899_vm14 = vcmp.eq.s32.totalorder %v2559_v36, %v867_v60  ;;  %v873_v34 = vpop.permute.xlu2 %872 }
 0x120   : > { %v574_v14 = vpop.f32.mrf.mxu1 }
 0x121   : > { %v1161_v0 = vpop.permute.xlu1 %1160 }
 0x124   : > { %1862 = vmatmul.msk.f32.gmra.mxu0 %vm350_vm15, %v2260_v39  ;;  %vm1192_vm15 = vcmp.eq.s32.totalorder %v2559_v36, %v1158_v61 }
 0x128   : > { %v577_v8 = vpop.f32.mrf.mxu1 }
 0x129   : > { %v2703_v3 = vpop.f32.mrf.mxu0  ;;  %1899 = vmatmul.msk.f32.vlgmr.msra.gmra.mxu2 %vm617_vm0, %v577_v8 }
 0x12a   : > { %v876_v40 = vpop.permute.xlu1 %875  ;;  %1488 = vmatpush.msra.mxu2 %v1483_v44  ;;  %v1470_v44 = vld [vmem:[%s3348_s4 + $0x10] sm:$0xff] }
 0x12c   : > { %1895 = vmatmul.msk.f32.vlgmr.msrb.gmra.mxu0 %vm617_vm0, %v2645_v41  ;;  %v1167_v41 = vpop.permute.xlu2 %1166 }
 0x130   : > { %v580_v7 = vpop.f32.mrf.mxu1 }
 0x131   : > { %v2716_v16 = vpop.f32.mrf.mxu0  ;;  %1900 = vmatmul.msk.f32.gmra.mxu2 %vm617_vm0, %v580_v7 }
 0x132   : > { %v879_v1 = vpop.permute.xlu1 %878 }
 0x134   : > { %1896 = vmatmul.msk.f32.gmra.mxu0 %vm617_vm0, %v2659_v2  ;;  %v1170_v4 = vpop.permute.xlu2 %1169 }
 0x138   : > { %v583_v6 = vpop.f32.mrf.mxu1 }
 0x139   : > { %v2728_v20 = vpop.f32.mrf.mxu0  ;;  %1901 = vmatmul.msk.f32.gmra.mxu2 %vm617_vm0, %v583_v6 }
 0x13c   : > { %1897 = vmatmul.msk.f32.gmra.mxu0 %vm617_vm0, %v571_v5  ;;  %v882_v5 = vpop.permute.xlu0 %881 }
 0x140   : > { %v586_v21 = vpop.f32.mrf.mxu1 }
 0x141   : > { %v2734_v23 = vpop.f32.mrf.mxu0  ;;  %1902 = vmatmul.msk.f32.gmra.mxu2 %vm617_vm0, %v586_v21 }
 0x144   : > { %1898 = vmatmul.msk.f32.gmra.mxu0 %vm617_vm0, %v574_v14  ;;  %v1173_v14 = vpop.permute.xlu1 %1172 }
 0x148   : > { %v589_v24 = vpop.f32.mrf.mxu1 }
 0x149   : > { %v2745_v25 = vpop.f32.mrf.mxu0  ;;  %1903 = vmatmul.msk.f32.gmra.mxu2 %vm617_vm0, %v589_v24  ;;  %v1179_v24 = vpop.permute.xlu0 %1178 }
 0x14c   : > { %1991 = vmatmul.msk.f32.vlgmr.msra.gmra.mxu0 %vm1186_vm3, %v2260_v39  ;;  %vm901_vm3 = vcmp.eq.s32.totalorder %v2559_v36, %v873_v34  ;;  %v1176_v7 = vpop.permute.xlu1 %1175 }
 0x150   : > { %v592_v26 = vpop.f32.mrf.mxu1 }
 0x151   : > { %v2750_v28 = vpop.f32.mrf.mxu0  ;;  %1904 = vmatmul.msk.f32.gmra.mxu2 %vm617_vm0, %v592_v26 }
 0x154   : > { %1992 = vmatmul.msk.f32.gmra.mxu0 %vm1187_vm5, %v2260_v39  ;;  %vm902_vm5 = vcmp.eq.s32.totalorder %v2559_v36, %v876_v40  ;;  %v891_v9 = vpop.permute.xlu1 %890 }
 0x158   : > { %v595_v10 = vpop.f32.mrf.mxu1 }
 0x159   : > { %v2761_v29 = vpop.f32.mrf.mxu0  ;;  %1905 = vmatmul.msk.f32.vlgmr.msra.gmra.mxu3 %vm617_vm0, %v595_v10  ;;  %1943 = vmatmul.msk.f32.vlgmr.msrb.gmra.mxu2 %vm892_vm1, %v2260_v39  ;;  %vm900_vm1 = vcmp.eq.s32.totalorder %v2559_v36, %v870_v63  ;;  %v1302_v10 = vld [vmem:[%s3346_s2 + $0x78] sm:$0xff]  ;;  %v1478_v63 = vld [vmem:[%s3348_s4 + $0x50] sm:$0xff] }
 0x15a   : > { %1069 = vmatpush.msra.mxu3 %v1008_v43  ;;  %1363 = vmatpush.msra.mxu1 %v1302_v10  ;;  %v1472_v10 = vld [vmem:[%s3348_s4 + $0x20] sm:$0xff] }
 0x15c   : > { %1993 = vmatmul.msk.f32.gmra.mxu0 %vm1188_vm7, %v2260_v39  ;;  %1070 = vmatpush.msra.mxu3 %v1007_v56  ;;  %vm903_vm7 = vcmp.eq.s32.totalorder %v2559_v36, %v879_v1  ;;  %v1185_v11 = vpop.permute.xlu1 %1184 }
 0x15d   : > { %1364 = vmatpush.msra.mxu1 %v1301_v15 }
 0x15e   : > { %1071 = vmatpush.msra.mxu3 %v1006_v35  ;;  %v1477_v35 = vld [vmem:[%s3348_s4 + $0x48] sm:$0xff] }
 0x160   : > { %v598_v17 = vpop.f32.mrf.mxu1  ;;  %1072 = vmatpush.msra.mxu3 %v1005_v19  ;;  %v1474_v19 = vld [vmem:[%s3348_s4 + $0x30] sm:$0xff] }
 0x161   : > { %1906 = vmatmul.msk.f32.gmra.mxu3 %vm617_vm0, %v598_v17  ;;  %1944 = vmatmul.msk.f32.gmra.mxu2 %vm893_vm2, %v2260_v39  ;;  %v2774_v32 = vpop.f32.mrf.mxu0  ;;  %vm1193_vm2 = vcmp.eq.s32.totalorder %v2559_v36, %v1161_v0 }
 0x164   : > { %1994 = vmatmul.msk.f32.gmra.mxu0 %vm1189_vm9, %v2260_v39  ;;  %vm904_vm9 = vcmp.eq.s32.totalorder %v2559_v36, %v882_v5  ;;  %v1475_v5 = vld [vmem:[%s3348_s4 + $0x38] sm:$0xff] }
 0x168   : > { %v601_v27 = vpop.f32.mrf.mxu1 }
 0x169   : > { %1907 = vmatmul.msk.f32.gmra.mxu3 %vm617_vm0, %v601_v27  ;;  %1945 = vmatmul.msk.f32.gmra.mxu2 %vm894_vm4, %v2260_v39  ;;  %v2787_v46 = vpop.f32.mrf.mxu0  ;;  %vm1194_vm4 = vcmp.eq.s32.totalorder %v2559_v36, %v1164_v37 }
 0x16c   : > { %1995 = vmatmul.msk.f32.gmra.mxu0 %vm1190_vm11, %v2260_v39 }
 0x170   : > { %v604_v22 = vpop.f32.mrf.mxu1 }
 0x171   : > { %1908 = vmatmul.msk.f32.gmra.mxu3 %vm617_vm0, %v604_v22  ;;  %1946 = vmatmul.msk.f32.gmra.mxu2 %vm895_vm6, %v2260_v39  ;;  %v2793_v47 = vpop.f32.mrf.mxu0  ;;  %vm1195_vm6 = vcmp.eq.s32.totalorder %v2559_v36, %v1167_v41  ;;  %v1476_v41 = vld [vmem:[%s3348_s4 + $0x40] sm:$0xff] }
 0x174   : > { %1996 = vmatmul.msk.f32.gmra.mxu0 %vm1191_vm13, %v2260_v39 }
 0x178   : > { %v607_v48 = vpop.f32.mrf.mxu1 }
 0x179   : > { %1909 = vmatmul.msk.f32.gmra.mxu3 %vm617_vm0, %v607_v48  ;;  %1947 = vmatmul.msk.f32.gmra.mxu2 %vm896_vm8, %v2260_v39  ;;  %v2801_v53 = vpop.f32.mrf.mxu0  ;;  %vm1196_vm8 = vcmp.eq.s32.totalorder %v2559_v36, %v1170_v4 }
 0x17c   : > { %1997 = vmatmul.msk.f32.gmra.mxu0 %vm1192_vm15, %v2260_v39  ;;  %vm1199_vm15 = vcmp.eq.s32.totalorder %v2559_v36, %v1179_v24 }
 0x180   : > { %v610_v51 = vpop.f32.mrf.mxu1 }
 0x181   : > { %1910 = vmatmul.msk.f32.gmra.mxu3 %vm617_vm0, %v610_v51  ;;  %1948 = vmatmul.msk.f32.gmra.mxu2 %vm897_vm10, %v2260_v39  ;;  %v2815_v58 = vpop.f32.mrf.mxu0  ;;  %vm1197_vm10 = vcmp.eq.s32.totalorder %v2559_v36, %v1173_v14  ;;  %v1481_v51 = vld [vmem:[%s3348_s4 + $0x68] sm:$0xff] }
 0x184   : > { %1998 = vmatmul.msk.f32.gmra.mxu0 %vm1193_vm2, %v2260_v39  ;;  %vm1201_vm2 = vcmp.eq.s32.totalorder %v2559_v36, %v1185_v11 }
 0x185   : > { %2006 = vmatmul.msk.f32.vlgmr.msrb.gmra.mxu1 %vm1201_vm2, %v2260_v39 }
 0x189   : > { %1911 = vmatmul.msk.f32.vlgmr.msrb.gmra.mxu3 %vm617_vm0, %v2703_v3  ;;  %1949 = vmatmul.msk.f32.gmra.mxu2 %vm898_vm12, %v2260_v39  ;;  %v2824_v62 = vpop.f32.mrf.mxu0  ;;  %v885_v3 = vpop.permute.xlu2 %884  ;;  %vm1198_vm12 = vcmp.eq.s32.totalorder %v2559_v36, %v1176_v7 }
 0x18a   : > { %vm905_vm11 = vcmp.eq.s32.totalorder %v2559_v36, %v885_v3 }
 0x18c   : > { %1999 = vmatmul.msk.f32.gmra.mxu0 %vm1194_vm4, %v2260_v39 }
 0x191   : > { %1912 = vmatmul.msk.f32.gmra.mxu3 %vm617_vm0, %v2716_v16  ;;  %1950 = vmatmul.msk.f32.gmra.mxu2 %vm899_vm14, %v2260_v39  ;;  %v2832_v18 = vpop.f32.mrf.mxu0  ;;  %vm907_vm14 = vcmp.eq.s32.totalorder %v2559_v36, %v891_v9 }
 0x194   : > { %2000 = vmatmul.msk.f32.gmra.mxu0 %vm1195_vm6, %v2260_v39 }
 0x199   : > { %1913 = vmatmul.msk.f32.gmra.mxu3 %vm617_vm0, %v2728_v20  ;;  %1951 = vmatmul.msk.f32.gmra.mxu2 %vm900_vm1, %v2260_v39  ;;  %v2845_v38 = vpop.f32.mrf.mxu0  ;;  %v888_v20 = vpop.permute.xlu2 %887 }
 0x19a   : > { %vm906_vm13 = vcmp.eq.s32.totalorder %v2559_v36, %v888_v20 }
 0x19c   : > { %2001 = vmatmul.msk.f32.gmra.mxu0 %vm1196_vm8, %v2260_v39 }
 0x1a1   : > { %1914 = vmatmul.msk.f32.gmra.mxu3 %vm617_vm0, %v2734_v23  ;;  %1952 = vmatmul.msk.f32.gmra.mxu2 %vm901_vm3, %v2260_v39  ;;  %v2858_v2 = vpop.f32.mrf.mxu0  ;;  %v1182_v12 = vpop.permute.xlu2 %1181 }
 0x1a2   : > { %vm1200_vm1 = vcmp.eq.s32.totalorder %v2559_v36, %v1182_v12 }
 0x1a4   : > { %2002 = vmatmul.msk.f32.gmra.mxu0 %vm1197_vm10, %v2260_v39 }
 0x1a9   : > { %1915 = vmatmul.msk.f32.gmra.mxu3 %vm617_vm0, %v2745_v25  ;;  %1953 = vmatmul.msk.f32.gmra.mxu2 %vm902_vm5, %v2260_v39  ;;  %v2869_v8 = vpop.f32.mrf.mxu0 }
 0x1ac   : > { %v2854_v42 = vpop.f32.mrf.mxu2  ;;  %2003 = vmatmul.msk.f32.gmra.mxu0 %vm1198_vm12, %v2260_v39 }
 0x1b1   : > { %1916 = vmatmul.msk.f32.gmra.mxu3 %vm617_vm0, %v2750_v28  ;;  %1954 = vmatmul.msk.f32.gmra.mxu2 %vm903_vm7, %v2260_v39  ;;  %v2879_v6 = vpop.f32.mrf.mxu0 }
 0x1b4   : > { %v2866_v13 = vpop.f32.mrf.mxu2  ;;  %2004 = vmatmul.msk.f32.gmra.mxu0 %vm1199_vm15, %v2260_v39 }
 0x1b9   : > { %1917 = vmatmul.msk.f32.gmra.mxu3 %vm617_vm0, %v2761_v29  ;;  %1955 = vmatmul.msk.f32.gmra.mxu2 %vm904_vm9, %v2260_v39  ;;  %v2894_v23 = vpop.f32.mrf.mxu0 }
 0x1bc   : > { %v2877_v16 = vpop.f32.mrf.mxu2  ;;  %2005 = vmatmul.msk.f32.gmra.mxu0 %vm1200_vm1, %v2260_v39 }
 0x1c1   : > { %1918 = vmatmul.msk.f32.gmra.mxu3 %vm617_vm0, %v2774_v32  ;;  %1956 = vmatmul.msk.f32.gmra.mxu2 %vm905_vm11, %v2260_v39  ;;  %v2904_v26 = vpop.f32.mrf.mxu0 }
 0x1c4   : > { %v2890_v21 = vpop.f32.mrf.mxu2 }
 0x1c9   : > { %1919 = vmatmul.msk.f32.gmra.mxu3 %vm617_vm0, %v2787_v46  ;;  %1957 = vmatmul.msk.f32.gmra.mxu2 %vm906_vm13, %v2260_v39  ;;  %v1251_v17 = vpop.f32.mrf.mxu0 }
 0x1cc   : > { %v2902_v25 = vpop.f32.mrf.mxu2 }
 0x1d1   : > { %1920 = vmatmul.msk.f32.gmra.mxu3 %vm617_vm0, %v2793_v47  ;;  %1958 = vmatmul.msk.f32.gmra.mxu2 %vm907_vm14, %v2260_v39  ;;  %v1300_v39 = vld [vmem:[%s3346_s2 + $0x68] sm:$0xff]  ;;  %v1254_v27 = vpop.f32.mrf.mxu0  ;;  %v1482_v47 = vld [vmem:[%s3348_s4 + $0x70] sm:$0xff] }
 0x1d2   : > { %1365 = vmatpush.msra.mxu1 %v1300_v39  ;;  %1489 = vmatpush.msra.mxu2 %v1482_v47 }
 0x1d4   : > { %v2920_v29 = vpop.f32.mrf.mxu2  ;;  %1366 = vmatpush.msra.mxu1 %v1299_v31  ;;  %1490 = vmatpush.msra.mxu2 %v1481_v51 }
 0x1d5   : > { %2007 = vmatmul.msk.f32.vlgmr.msra.gmra.mxu1 %vm617_vm0, %v1251_v17  ;;  %v1471_v17 = vld [vmem:[%s3348_s4 + $0x18] sm:$0xff] }
 0x1d6   : > { %1491 = vmatpush.msra.mxu2 %v1480_v55  ;;  %v1468_v55 = vld [vmem:[%s3348_s4] sm:$0xff] }
 0x1d8   : > { %1492 = vmatpush.msra.mxu2 %v1479_v59 }
 0x1d9   : > { %1921 = vmatmul.msk.f32.gmra.mxu3 %vm617_vm0, %v2801_v53  ;;  %v1257_v46 = vpop.f32.mrf.mxu0 }
 0x1da   : > { %1493 = vmatpush.msra.mxu2 %v1478_v63 }
 0x1dc   : > { %v2906_v28 = vpop.f32.mrf.mxu3  ;;  %v957_v33 = vpop.f32.mrf.mxu2  ;;  %1494 = vmatpush.msra.mxu2 %v1477_v35 }
 0x1dd   : > { %2008 = vmatmul.msk.f32.gmra.mxu1 %vm617_vm0, %v1254_v27 }
 0x1de   : > { %1495 = vmatpush.msra.mxu2 %v1476_v41 }
 0x1e0   : > { %1496 = vmatpush.msra.mxu2 %v1475_v5 }
 0x1e1   : > { %1922 = vmatmul.msk.f32.gmra.mxu3 %vm617_vm0, %v2815_v58  ;;  %v1260_v49 = vpop.f32.mrf.mxu0 }
 0x1e2   : > { %1497 = vmatpush.msra.mxu2 %v1474_v19 }
 0x1e4   : > { %v2922_v30 = vpop.f32.mrf.mxu3  ;;  %v960_v45 = vpop.f32.mrf.mxu2 }
 0x1e5   : > { %2009 = vmatmul.msk.f32.gmra.mxu1 %vm617_vm0, %v1257_v46 }
 0x1e9   : > { %1923 = vmatmul.msk.f32.gmra.mxu3 %vm617_vm0, %v2824_v62  ;;  %v1263_v52 = vpop.f32.mrf.mxu0 }
 0x1ec   : > { %v2933_v32 = vpop.f32.mrf.mxu3  ;;  %v963_v48 = vpop.f32.mrf.mxu2 }
 0x1ed   : > { %2010 = vmatmul.msk.f32.gmra.mxu1 %vm617_vm0, %v1260_v49  ;;  %v1469_v49 = vld [vmem:[%s3348_s4 + $0x8] sm:$0xff] }
 0x1f1   : > { %1924 = vmatmul.msk.f32.gmra.mxu3 %vm617_vm0, %v2832_v18  ;;  %v1266_v56 = vpop.f32.mrf.mxu0 }
 0x1f4   : > { %v2938_v43 = vpop.f32.mrf.mxu3  ;;  %v966_v53 = vpop.f32.mrf.mxu2 }
 0x1f5   : > { %2011 = vmatmul.msk.f32.gmra.mxu1 %vm617_vm0, %v1263_v52 }
 0x1f9   : > { %1925 = vmatmul.msk.f32.gmra.mxu3 %vm617_vm0, %v2845_v38  ;;  %v1269_v60 = vpop.f32.mrf.mxu0 }
 0x1fc   : > { %v2946_v22 = vpop.f32.mrf.mxu3  ;;  %v969_v57 = vpop.f32.mrf.mxu2 }
 0x1fd   : > { %2012 = vmatmul.msk.f32.gmra.mxu1 %vm617_vm0, %v1266_v56 }
 0x201   : > { %1926 = vmatmul.msk.f32.gmra.mxu3 %vm617_vm0, %v2858_v2  ;;  %v1272_v0 = vpop.f32.mrf.mxu0 }
 0x204   : > { %v2954_v50 = vpop.f32.mrf.mxu3  ;;  %v972_v62 = vpop.f32.mrf.mxu2 }
 0x205   : > { %2013 = vmatmul.msk.f32.gmra.mxu1 %vm617_vm0, %v1269_v60 }
 0x209   : > { %1959 = vmatmul.msk.f32.vlgmr.msra.gmra.mxu3 %vm617_vm0, %v957_v33  ;;  %v1275_v38 = vpop.f32.mrf.mxu0 }
 0x20c   : > { %v2961_v54 = vpop.f32.mrf.mxu3  ;;  %v975_v37 = vpop.f32.mrf.mxu2 }
 0x20d   : > { %2014 = vmatmul.msk.f32.gmra.mxu1 %vm617_vm0, %v1272_v0 }
 0x211   : > { %1960 = vmatmul.msk.f32.gmra.mxu3 %vm617_vm0, %v960_v45  ;;  %v1278_v2 = vpop.f32.mrf.mxu0 }
 0x214   : > { %v2968_v58 = vpop.f32.mrf.mxu3  ;;  %v978_v1 = vpop.f32.mrf.mxu2 }
 0x215   : > { %2015 = vmatmul.msk.f32.gmra.mxu1 %vm617_vm0, %v1275_v38  ;;  %v3064_v38 = vld [vmem:[%s3347_s3] ss:$0 sm:$0xff]  ;;  %v800_v5 = vadd.f32 %v2968_v58, %v2879_v6 }
 0x219   : > { %1961 = vmatmul.msk.f32.gmra.mxu3 %vm617_vm0, %v963_v48  ;;  %v1281_v14 = vpop.f32.mrf.mxu0  ;;  %v1296_v48 = vpop.f32.mrf.mxu1 }
 0x21c   : > { %v2975_v61 = vpop.f32.mrf.mxu3  ;;  %v981_v3 = vpop.f32.mrf.mxu2 }
 0x21d   : > { %2016 = vmatmul.msk.f32.gmra.mxu1 %vm617_vm0, %v1278_v2 }
 0x221   : > { %1962 = vmatmul.msk.f32.gmra.mxu3 %vm617_vm0, %v966_v53  ;;  %v1284_v20 = vpop.f32.mrf.mxu0 }
 0x224   : > { %v805_v18 = vpop.f32.mrf.mxu3  ;;  %v984_v24 = vpop.f32.mrf.mxu2 }
 0x225   : > { %v2983_v34 = vadd.f32 %v805_v18, %v2904_v26  ;;  %2017 = vmatmul.msk.f32.gmra.mxu1 %vm617_vm0, %v1281_v14  ;;  %v1473_v26 = vld [vmem:[%s3348_s4 + $0x28] sm:$0xff]  ;;  %v797_v18 = vadd.f32 %v2961_v54, %v2869_v8 }
 0x226   : > { %1498 = vmatpush.msra.mxu2 %v1473_v26 }
 0x228   : > { %1499 = vmatpush.msra.mxu2 %v1472_v10 }
 0x229   : > { %1963 = vmatmul.msk.f32.gmra.mxu3 %vm617_vm0, %v969_v57  ;;  %v1287_v12 = vpop.f32.mrf.mxu0 }
 0x22a   : > { %1500 = vmatpush.msra.mxu2 %v1471_v17 }
 0x22c   : > { %v2990_v40 = vpop.f32.mrf.mxu3  ;;  %v987_v15 = vpop.f32.mrf.mxu2  ;;  %1501 = vmatpush.msra.mxu2 %v1470_v44 }
 0x22d   : > { %2018 = vmatmul.msk.f32.gmra.mxu1 %vm617_vm0, %v1284_v20 }
 0x22e   : > { %1502 = vmatpush.msra.mxu2 %v1469_v49 }
 0x230   : > { %1503 = vmatpush.msra.mxu2 %v1468_v55 }
 0x231   : > { %1964 = vmatmul.msk.f32.gmra.mxu3 %vm617_vm0, %v972_v62  ;;  %v1290_v31 = vpop.f32.mrf.mxu0 }
 0x234   : > { %v2997_v4 = vpop.f32.mrf.mxu3  ;;  %v990_v33 = vpop.f32.mrf.mxu2 }
 0x235   : > { %2019 = vmatmul.msk.f32.gmra.mxu1 %vm617_vm0, %v1287_v12  ;;  %v812_v55 = vadd.f32 %v2997_v4, %v2866_v13 }
 0x239   : > { %1965 = vmatmul.msk.f32.gmra.mxu3 %vm617_vm0, %v975_v37  ;;  %v1293_v45 = vpop.f32.mrf.mxu0 }
 0x23c   : > { %v3004_v7 = vpop.f32.mrf.mxu3  ;;  %v993_v46 = vpop.f32.mrf.mxu2 }
 0x23d   : > { %2020 = vmatmul.msk.f32.gmra.mxu1 %vm617_vm0, %v1290_v31 }
 0x241   : > { %1966 = vmatmul.msk.f32.gmra.mxu3 %vm617_vm0, %v978_v1 }
 0x244   : > { %v3011_v9 = vpop.f32.mrf.mxu3  ;;  %v996_v51 = vpop.f32.mrf.mxu2 }
 0x245   : > { %2021 = vmatmul.msk.f32.gmra.mxu1 %vm617_vm0, %v1293_v45  ;;  %v818_v13 = vadd.f32 %v3011_v9, %v2890_v21 }
 0x249   : > { %1967 = vmatmul.msk.f32.gmra.mxu3 %vm617_vm0, %v981_v3 }
 0x24c   : > { %v3018_v11 = vpop.f32.mrf.mxu3  ;;  %v999_v57 = vpop.f32.mrf.mxu2 }
 0x24d   : > { %2022 = vmatmul.msk.f32.gmra.mxu1 %vm617_vm0, %v1296_v48 }
 0x251   : > { %1968 = vmatmul.msk.f32.gmra.mxu3 %vm617_vm0, %v984_v24  ;;  %v803_v24 = vadd.f32 %v2975_v61, %v2894_v23 }
 0x252   : > { %v1368_v53 = vpop.f32.mrf.mxu1 }
 0x254   : > { %v3024_v39 = vpop.f32.mrf.mxu3  ;;  %v1002_v62 = vpop.f32.mrf.mxu2 }
 0x255   : > { %v824_v21 = vadd.f32 %v3024_v39, %v2920_v29 }
 0x259   : > { %1969 = vmatmul.msk.f32.gmra.mxu3 %vm617_vm0, %v987_v15 }
 0x25a   : > { %v1371_v60 = vpop.f32.mrf.mxu1 }
 0x25c   : > { %v3031_v27 = vpop.f32.mrf.mxu3 }
 0x261   : > { %1970 = vmatmul.msk.f32.gmra.mxu3 %vm617_vm0, %v990_v33 }
 0x262   : > { %v1374_v0 = vpop.f32.mrf.mxu1 }
 0x264   : > { %v3038_v47 = vpop.f32.mrf.mxu3 }
 0x265   : > { %v830_v29 = vadd.f32 %v3038_v47, %v2922_v30 }
 0x269   : > { %1971 = vmatmul.msk.f32.gmra.mxu3 %vm617_vm0, %v993_v46  ;;  %v809_v46 = vadd.f32 %v2990_v40, %v2854_v42  ;;  %v815_v42 = vadd.f32 %v3004_v7, %v2877_v16  ;;  %v821_v16 = vadd.f32 %v3018_v11, %v2902_v25  ;;  %v827_v25 = vadd.f32 %v3031_v27, %v2906_v28 }
 0x26a   : > { %v1377_v1 = vpop.f32.mrf.mxu1 }
 0x26c   : > { %v3045_v52 = vpop.f32.mrf.mxu3 }
 0x26d   : > { %v833_v28 = vadd.f32 %v3045_v52, %v2933_v32 }
 0x271   : > { %1972 = vmatmul.msk.f32.gmra.mxu3 %vm617_vm0, %v996_v51 }
 0x272   : > { %v1380_v54 = vpop.f32.mrf.mxu1 }
 0x274   : > { %v3051_v56 = vpop.f32.mrf.mxu3 }
 0x275   : > { %v836_v30 = vadd.f32 %v3051_v56, %v2938_v43 }
 0x279   : > { %1973 = vmatmul.msk.f32.gmra.mxu3 %vm617_vm0, %v999_v57 }
 0x27a   : > { %v1383_v58 = vpop.f32.mrf.mxu1 }
 0x27c   : > { %v3054_v59 = vpop.f32.mrf.mxu3 }
 0x27d   : > { %v839_v32 = vadd.f32 %v3054_v59, %v2946_v22  ;;  %v3114_v59 = vld [vmem:[%s3349_s5] ss:$0 sm:$0xff] }
 0x281   : > { %1974 = vmatmul.msk.f32.gmra.mxu3 %vm617_vm0, %v1002_v62  ;;  %vm1553_vm0 = vcmp.lt.s32.totalorder %v2559_v36, 49 }
 0x282   : > { %v1386_v49 = vpop.f32.mrf.mxu1 }
 0x284   : > { %v3057_v63 = vpop.f32.mrf.mxu3 }
 0x285   : > { %v842_v43 = vadd.f32 %v3057_v63, %v2954_v50 }
 0x28c   : > { %v1074_v35 = vpop.f32.mrf.mxu3 }
 0x28d   : > { %v1122_v37 = vadd.f32 %v1074_v35, %v797_v18 }
 0x28f   : > { %v1416_v41 = vadd.f32 %v1368_v53, %v1122_v37 }
 0x291   : > { %v1436_v2 = vadd.f32 %v3064_v38, %v1416_v41 }
 0x293   : > { %v1452_v14 = vmax.f32 %v1436_v2, 0.0 }
 0x294   : > { %v1077_v3 = vpop.f32.mrf.mxu3 }
 0x295   : > { %v1123_v19 = vadd.f32 %v1077_v3, %v800_v5  ;;  %1504 = vmatmul.f32.vlgmr.msra.gmra.mxu2 %v1452_v14 }
 0x297   : > { %v1417_v20 = vadd.f32 %v1371_v60, %v1123_v19 }
 0x299   : > { %v1437_v8 = vadd.f32 %v3064_v38, %v1417_v20 }
 0x29b   : > { %v1453_v26 = vmax.f32 %v1437_v8, 0.0 }
 0x29c   : > { %v1080_v12 = vpop.f32.mrf.mxu3 }
 0x29d   : > { %v1124_v10 = vadd.f32 %v1080_v12, %v803_v24  ;;  %1507 = vmatmul.f32.gmra.mxu2 %v1453_v26 }
 0x29f   : > { %v1418_v15 = vadd.f32 %v1374_v0, %v1124_v10  ;;  %v1389_v0 = vpop.f32.mrf.mxu1 }
 0x2a1   : > { %v1438_v17 = vadd.f32 %v3064_v38, %v1418_v15 }
 0x2a3   : > { %v1454_v31 = vmax.f32 %v1438_v17, 0.0 }
 0x2a4   : > { %v1083_v6 = vpop.f32.mrf.mxu3 }
 0x2a5   : > { %v1125_v33 = vadd.f32 %v1083_v6, %v2983_v34  ;;  %1510 = vmatmul.f32.gmra.mxu2 %v1454_v31 }
 0x2a7   : > { %v1419_v44 = vadd.f32 %v1377_v1, %v1125_v33  ;;  %v1392_v2 = vpop.f32.mrf.mxu1 }
 0x2a9   : > { %v1439_v45 = vadd.f32 %v3064_v38, %v1419_v44 }
 0x2ab   : > { %v1455_v23 = vmax.f32 %v1439_v45, 0.0 }
 0x2ac   : > { %v1086_v61 = vpop.f32.mrf.mxu3 }
 0x2ad   : > { %v1126_v48 = vadd.f32 %v1086_v61, %v809_v46  ;;  %1513 = vmatmul.f32.gmra.mxu2 %v1455_v23 }
 0x2af   : > { %v1420_v51 = vadd.f32 %v1380_v54, %v1126_v48  ;;  %v1395_v8 = vpop.f32.mrf.mxu1 }
 0x2b1   : > { %v1440_v53 = vadd.f32 %v3064_v38, %v1420_v51 }
 0x2b3   : > { %v1456_v57 = vmax.f32 %v1440_v53, 0.0 }
 0x2b4   : > { %v1089_v34 = vpop.f32.mrf.mxu3 }
 0x2b5   : > { %v1127_v60 = vadd.f32 %v1089_v34, %v812_v55  ;;  %1516 = vmatmul.f32.gmra.mxu2 %v1456_v57 }
 0x2b7   : > { %v1421_v62 = vadd.f32 %v1383_v58, %v1127_v60  ;;  %v1398_v15 = vpop.f32.mrf.mxu1 }
 0x2b9   : > { %v1441_v18 = vadd.f32 %v3064_v38, %v1421_v62 }
 0x2bb   : > { %v1457_v40 = vmax.f32 %v1441_v18, 0.0 }
 0x2bc   : > { %v1092_v35 = vpop.f32.mrf.mxu3 }
 0x2bd   : > { %v1128_v37 = vadd.f32 %v1092_v35, %v815_v42  ;;  %1519 = vmatmul.f32.gmra.mxu2 %v1457_v40 }
 0x2bf   : > { %v1422_v41 = vadd.f32 %v1386_v49, %v1128_v37  ;;  %v1401_v44 = vpop.f32.mrf.mxu1 }
 0x2c1   : > { %v1442_v1 = vadd.f32 %v3064_v38, %v1422_v41 }
 0x2c3   : > { %v1458_v4 = vmax.f32 %v1442_v1, 0.0 }
 0x2c4   : > { %v1095_v5 = vpop.f32.mrf.mxu3 }
 0x2c5   : > { %v1129_v14 = vadd.f32 %v1095_v5, %v818_v13  ;;  %1522 = vmatmul.f32.gmra.mxu2 %v1458_v4 }
 0x2c7   : > { %v1423_v3 = vadd.f32 %v1389_v0, %v1129_v14  ;;  %v1404_v49 = vpop.f32.mrf.mxu1 }
 0x2c9   : > { %v1443_v19 = vadd.f32 %v3064_v38, %v1423_v3 }
 0x2cb   : > { %v1459_v7 = vmax.f32 %v1443_v19, 0.0 }
 0x2cc   : > { %v1098_v20 = vpop.f32.mrf.mxu3 }
 0x2cd   : > { %v1130_v54 = vadd.f32 %v1098_v20, %v821_v16  ;;  %1525 = vmatmul.f32.gmra.mxu2 %v1459_v7 }
 0x2cf   : > { %v1424_v24 = vadd.f32 %v1392_v2, %v1130_v54  ;;  %v1407_v34 = vpop.f32.mrf.mxu1 }
 0x2d1   : > { %v1444_v26 = vadd.f32 %v3064_v38, %v1424_v24 }
 0x2d3   : > { %v1460_v9 = vmax.f32 %v1444_v26, 0.0 }
 0x2d4   : > { %v1101_v12 = vpop.f32.mrf.mxu3 }
 0x2d5   : > { %v1131_v10 = vadd.f32 %v1101_v12, %v824_v21  ;;  %1528 = vmatmul.f32.gmra.mxu2 %v1460_v9 }
 0x2d7   : > { %v1425_v17 = vadd.f32 %v1395_v8, %v1131_v10  ;;  %v1410_v40 = vpop.f32.mrf.mxu1 }
 0x2d9   : > { %v1445_v31 = vadd.f32 %v3064_v38, %v1425_v17 }
 0x2db   : > { %v1461_v11 = vmax.f32 %v1445_v31, 0.0 }
 0x2dc   : > { %v1104_v6 = vpop.f32.mrf.mxu3 }
 0x2dd   : > { %v1132_v58 = vadd.f32 %v1104_v6, %v827_v25  ;;  %1531 = vmatmul.f32.gmra.mxu2 %v1461_v11 }
 0x2df   : > { %v1426_v33 = vadd.f32 %v1398_v15, %v1132_v58  ;;  %v1413_v13 = vpop.f32.mrf.mxu1 }
 0x2e1   : > { %v1446_v45 = vadd.f32 %v3064_v38, %v1426_v33 }
 0x2e3   : > { %v1462_v39 = vmax.f32 %v1446_v45, 0.0 }
 0x2e4   : > { %v1107_v46 = vpop.f32.mrf.mxu3 }
 0x2e5   : > { %v1133_v23 = vadd.f32 %v1107_v46, %v830_v29  ;;  %1534 = vmatmul.f32.gmra.mxu2 %v1462_v39 }
 0x2e7   : > { %v1427_v61 = vadd.f32 %v1401_v44, %v1133_v23 }
 0x2e9   : > { %v1447_v48 = vadd.f32 %v3064_v38, %v1427_v61 }
 0x2eb   : > { %v1463_v27 = vmax.f32 %v1447_v48, 0.0 }
 0x2ec   : > { %v1110_v51 = vpop.f32.mrf.mxu3 }
 0x2ed   : > { %v1134_v53 = vadd.f32 %v1110_v51, %v833_v28  ;;  %1537 = vmatmul.f32.gmra.mxu2 %v1463_v27 }
 0x2ef   : > { %v1428_v55 = vadd.f32 %v1404_v49, %v1134_v53 }
 0x2f1   : > { %v1448_v57 = vadd.f32 %v3064_v38, %v1428_v55 }
 0x2f3   : > { %v1464_v47 = vmax.f32 %v1448_v57, 0.0 }
 0x2f4   : > { %v1113_v60 = vpop.f32.mrf.mxu3 }
 0x2f5   : > { %v1135_v62 = vadd.f32 %v1113_v60, %v836_v30  ;;  %1540 = vmatmul.f32.gmra.mxu2 %v1464_v47 }
 0x2f7   : > { %v1429_v0 = vadd.f32 %v1407_v34, %v1135_v62 }
 0x2f9   : > { %v1449_v18 = vadd.f32 %v3064_v38, %v1429_v0 }
 0x2fb   : > { %v1465_v52 = vmax.f32 %v1449_v18, 0.0 }
 0x2fc   : > { %v1116_v42 = vpop.f32.mrf.mxu3 }
 0x2fd   : > { %v1136_v35 = vadd.f32 %v1116_v42, %v839_v32  ;;  %1543 = vmatmul.f32.gmra.mxu2 %v1465_v52 }
 0x2ff   : > { %v1430_v37 = vadd.f32 %v1410_v40, %v1136_v35 }
 0x301   : > { %v1450_v41 = vadd.f32 %v3064_v38, %v1430_v37 }
 0x303   : > { %v1466_v56 = vmax.f32 %v1450_v41, 0.0 }
 0x304   : > { %v1119_v1 = vpop.f32.mrf.mxu3 }
 0x305   : > { %v1137_v2 = vadd.f32 %v1119_v1, %v842_v43  ;;  %1546 = vmatmul.f32.gmra.mxu2 %v1466_v56 }
 0x307   : > { %v1431_v4 = vadd.f32 %v1413_v13, %v1137_v2 }
 0x309   : > { %v1451_v5 = vadd.f32 %v3064_v38, %v1431_v4 }
 0x30b   : > { %v1467_v22 = vmax.f32 %v1451_v5, 0.0 }
 0x30d   : > { %1549 = vmatmul.f32.gmra.mxu2 %v1467_v22 }
 0x318   : > { %v1505_v14 = vpop.f32.mrf.mxu2 }
 0x319   : > { %v1506_v50 = vadd.f32 %v3114_v59, %v1505_v14 }
 0x31b   : > { %v1554_v63 = vsel %vm1553_vm0, %v1506_v50, -1e+30 }
 0x31c   : > { %1570 = vmax.xlane.f32.xlu2 %v1554_v63 }
 0x320   : > { %v1508_v3 = vpop.f32.mrf.mxu2 }
 0x321   : > { %v1509_v19 = vadd.f32 %v3114_v59, %v1508_v3 }
 0x323   : > { %v3123_v38 = vsel %vm1553_vm0, %v1509_v19, -1e+30 }
 0x324   : > { %1572 = vmax.xlane.f32.xlu0 %v3123_v38 }
 0x328   : > { %v1511_v16 = vpop.f32.mrf.mxu2 }
 0x329   : > { %v1512_v7 = vadd.f32 %v3114_v59, %v1511_v16 }
 0x32b   : > { %v3129_v20 = vsel %vm1553_vm0, %v1512_v7, -1e+30 }
 0x32c   : > { %1574 = vmax.xlane.f32.xlu1 %v3129_v20 }
 0x330   : > { %v1514_v8 = vpop.f32.mrf.mxu2 }
 0x331   : > { %v1515_v54 = vadd.f32 %v3114_v59, %v1514_v8 }
 0x333   : > { %v3135_v24 = vsel %vm1553_vm0, %v1515_v54, -1e+30 }
 0x334   : > { %1576 = vmax.xlane.f32.xlu2 %v3135_v24 }
 0x338   : > { %v1517_v26 = vpop.f32.mrf.mxu2 }
 0x339   : > { %v1518_v21 = vadd.f32 %v3114_v59, %v1517_v26 }
 0x33b   : > { %v3141_v9 = vsel %vm1553_vm0, %v1518_v21, -1e+30 }
 0x33c   : > { %1578 = vmax.xlane.f32.xlu2 %v3141_v9 }
 0x340   : > { %v1520_v12 = vpop.f32.mrf.mxu2 }
 0x341   : > { %v1521_v10 = vadd.f32 %v3114_v59, %v1520_v12 }
 0x343   : > { %v3147_v15 = vsel %vm1553_vm0, %v1521_v10, -1e+30 }
 0x344   : > { %1580 = vmax.xlane.f32.xlu0 %v3147_v15 }
 0x348   : > { %v1523_v17 = vpop.f32.mrf.mxu2 }
 0x349   : > { %v1524_v31 = vadd.f32 %v3114_v59, %v1523_v17 }
 0x34b   : > { %v3153_v25 = vsel %vm1553_vm0, %v1524_v31, -1e+30 }
 0x34c   : > { %1582 = vmax.xlane.f32.xlu1 %v3153_v25 }
 0x350   : > { %v1526_v11 = vpop.f32.mrf.mxu2 }
 0x351   : > { %v1527_v6 = vadd.f32 %v3114_v59, %v1526_v11 }
 0x353   : > { %v3159_v58 = vsel %vm1553_vm0, %v1527_v6, -1e+30 }
 0x354   : > { %1584 = vmax.xlane.f32.xlu2 %v3159_v58 }
 0x358   : > { %v1529_v33 = vpop.f32.mrf.mxu2 }
 0x359   : > { %v1530_v44 = vadd.f32 %v3114_v59, %v1529_v33 }
 0x35b   : > { %v3165_v45 = vsel %vm1553_vm0, %v1530_v44, -1e+30 }
 0x35c   : > { %1586 = vmax.xlane.f32.xlu0 %v3165_v45 }
 0x360   : > { %v1532_v29 = vpop.f32.mrf.mxu2 }
 0x361   : > { %v1533_v39 = vadd.f32 %v3114_v59, %v1532_v29 }
 0x363   : > { %v3171_v46 = vsel %vm1553_vm0, %v1533_v39, -1e+30 }
 0x364   : > { %1588 = vmax.xlane.f32.xlu1 %v3171_v46 }
 0x368   : > { %v1535_v23 = vpop.f32.mrf.mxu2 }
 0x369   : > { %v1536_v61 = vadd.f32 %v3114_v59, %v1535_v23 }
 0x36b   : > { %v3177_v48 = vsel %vm1553_vm0, %v1536_v61, -1e+30 }
 0x36c   : > { %1590 = vmax.xlane.f32.xlu2 %v3177_v48 }
 0x370   : > { %v1538_v49 = vpop.f32.mrf.mxu2 }
 0x371   : > { %v1539_v28 = vadd.f32 %v3114_v59, %v1538_v49 }
 0x373   : > { %v3183_v27 = vsel %vm1553_vm0, %v1539_v28, -1e+30 }
 0x374   : > { %1592 = vmax.xlane.f32.xlu0 %v3183_v27 }
 0x378   : > { %v1541_v51 = vpop.f32.mrf.mxu2 }
 0x379   : > { %v1542_v53 = vadd.f32 %v3114_v59, %v1541_v51 }
 0x37b   : > { %v3189_v55 = vsel %vm1553_vm0, %v1542_v53, -1e+30 }
 0x37c   : > { %1594 = vmax.xlane.f32.xlu1 %v3189_v55 }
 0x380   : > { %v1544_v57 = vpop.f32.mrf.mxu2 }
 0x381   : > { %v1545_v34 = vadd.f32 %v3114_v59, %v1544_v57 }
 0x383   : > { %v3195_v30 = vsel %vm1553_vm0, %v1545_v34, -1e+30 }
 0x384   : > { %1596 = vmax.xlane.f32.xlu2 %v3195_v30 }
 0x388   : > { %v1547_v47 = vpop.f32.mrf.mxu2 }
 0x389   : > { %v1548_v60 = vadd.f32 %v3114_v59, %v1547_v47 }
 0x38b   : > { %v3201_v62 = vsel %vm1553_vm0, %v1548_v60, -1e+30 }
 0x38c   : > { %1598 = vmax.xlane.f32.xlu0 %v3201_v62 }
 0x38f   : > { %v1571_v0 = vpop.xlane.xlu2 %1570 }
 0x390   : > { %v3204_v18 = vsub.f32 %v1554_v63, %v1571_v0  ;;  %v1550_v32 = vpop.f32.mrf.mxu2 }
 0x391   : > { %v1551_v52 = vadd.f32 %v3114_v59, %v1550_v32 }
 0x392   : > { %v1618_v42 = vmul.f32 1.442695, %v3204_v18 }
 0x393   : > { %v3210_v40 = vsel %vm1553_vm0, %v1551_v52, -1e+30 }
 0x394   : > { %2130 = vpow2.f32 %v1618_v42  ;;  %1600 = vmax.xlane.f32.xlu1 %v3210_v40 }
 0x397   : > { %v1573_v35 = vpop.xlane.xlu0 %1572 }
 0x398   : > { %v3214_v37 = vsub.f32 %v3123_v38, %v1573_v35 }
 0x39a   : > { %v2131_v41 = vpop.eup %2130  ;;  %v1620_v43 = vmul.f32 1.442695, %v3214_v37 }
 0x39b   : > { %1650 = vadd.xlane.f32.xlu2 %v2131_v41 }
 0x39c   : > { %2132 = vpow2.f32 %v1620_v43 }
 0x39f   : > { %v1575_v56 = vpop.xlane.xlu1 %1574 }
 0x3a0   : > { %v3218_v1 = vsub.f32 %v3129_v20, %v1575_v56 }
 0x3a2   : > { %v2133_v2 = vpop.eup %2132  ;;  %v1622_v36 = vmul.f32 1.442695, %v3218_v1 }
 0x3a3   : > { %1652 = vadd.xlane.f32.xlu0 %v2133_v2 }
 0x3a4   : > { %2134 = vpow2.f32 %v1622_v36 }
 0x3a7   : > { %v1577_v13 = vpop.xlane.xlu2 %1576 }
 0x3a8   : > { %v3222_v4 = vsub.f32 %v3135_v24, %v1577_v13 }
 0x3aa   : > { %v2135_v5 = vpop.eup %2134  ;;  %v1624_v22 = vmul.f32 1.442695, %v3222_v4 }
 0x3ab   : > { %1654 = vadd.xlane.f32.xlu1 %v2135_v5 }
 0x3ac   : > { %2136 = vpow2.f32 %v1624_v22 }
 0x3af   : > { %v1579_v59 = vpop.xlane.xlu2 %1578 }
 0x3b0   : > { %v3226_v14 = vsub.f32 %v3141_v9, %v1579_v59 }
 0x3b2   : > { %v2137_v50 = vpop.eup %2136  ;;  %v1626_v63 = vmul.f32 1.442695, %v3226_v14 }
 0x3b3   : > { %1656 = vadd.xlane.f32.xlu2 %v2137_v50 }
 0x3b4   : > { %2138 = vpow2.f32 %v1626_v63 }
 0x3b7   : > { %v1581_v3 = vpop.xlane.xlu0 %1580 }
 0x3b8   : > { %v3230_v19 = vsub.f32 %v3147_v15, %v1581_v3 }
 0x3ba   : > { %v2139_v38 = vpop.eup %2138  ;;  %v1628_v16 = vmul.f32 1.442695, %v3230_v19 }
 0x3bb   : > { %1658 = vadd.xlane.f32.xlu0 %v2139_v38 }
 0x3bc   : > { %2140 = vpow2.f32 %v1628_v16 }
 0x3bf   : > { %v1583_v7 = vpop.xlane.xlu1 %1582 }
 0x3c0   : > { %v3234_v20 = vsub.f32 %v3153_v25, %v1583_v7 }
 0x3c2   : > { %v2141_v8 = vpop.eup %2140  ;;  %v1630_v54 = vmul.f32 1.442695, %v3234_v20 }
 0x3c3   : > { %1660 = vadd.xlane.f32.xlu1 %v2141_v8 }
 0x3c4   : > { %2142 = vpow2.f32 %v1630_v54 }
 0x3c7   : > { %v1585_v24 = vpop.xlane.xlu2 %1584 }
 0x3c8   : > { %v3238_v26 = vsub.f32 %v3159_v58, %v1585_v24 }
 0x3ca   : > { %v2143_v21 = vpop.eup %2142  ;;  %v1632_v9 = vmul.f32 1.442695, %v3238_v26 }
 0x3cb   : > { %1662 = vadd.xlane.f32.xlu2 %v2143_v21 }
 0x3cc   : > { %2144 = vpow2.f32 %v1632_v9 }
 0x3cf   : > { %v1587_v12 = vpop.xlane.xlu0 %1586 }
 0x3d0   : > { %v3242_v10 = vsub.f32 %v3165_v45, %v1587_v12 }
 0x3d2   : > { %v2145_v15 = vpop.eup %2144  ;;  %v1634_v17 = vmul.f32 1.442695, %v3242_v10 }
 0x3d3   : > { %1664 = vadd.xlane.f32.xlu0 %v2145_v15 }
 0x3d4   : > { %2146 = vpow2.f32 %v1634_v17 }
 0x3d7   : > { %v1589_v31 = vpop.xlane.xlu1 %1588 }
 0x3d8   : > { %v3246_v25 = vsub.f32 %v3171_v46, %v1589_v31 }
 0x3da   : > { %v2147_v11 = vpop.eup %2146  ;;  %v1636_v6 = vmul.f32 1.442695, %v3246_v25 }
 0x3db   : > { %1666 = vadd.xlane.f32.xlu1 %v2147_v11 }
 0x3dc   : > { %2148 = vpow2.f32 %v1636_v6 }
 0x3df   : > { %v1591_v58 = vpop.xlane.xlu2 %1590 }
 0x3e0   : > { %v3250_v33 = vsub.f32 %v3177_v48, %v1591_v58 }
 0x3e2   : > { %v2149_v44 = vpop.eup %2148  ;;  %v1638_v45 = vmul.f32 1.442695, %v3250_v33 }
 0x3e3   : > { %1668 = vadd.xlane.f32.xlu2 %v2149_v44 }
 0x3e4   : > { %2150 = vpow2.f32 %v1638_v45 }
 0x3e7   : > { %v1593_v29 = vpop.xlane.xlu0 %1592 }
 0x3e8   : > { %v3254_v39 = vsub.f32 %v3183_v27, %v1593_v29 }
 0x3ea   : > { %v2151_v46 = vpop.eup %2150  ;;  %v1640_v23 = vmul.f32 1.442695, %v3254_v39 }
 0x3eb   : > { %1670 = vadd.xlane.f32.xlu0 %v2151_v46 }
 0x3ec   : > { %2152 = vpow2.f32 %v1640_v23 }
 0x3ef   : > { %v1595_v61 = vpop.xlane.xlu1 %1594 }
 0x3f0   : > { %v3258_v49 = vsub.f32 %v3189_v55, %v1595_v61 }
 0x3f2   : > { %v2153_v48 = vpop.eup %2152  ;;  %v1642_v28 = vmul.f32 1.442695, %v3258_v49 }
 0x3f3   : > { %1672 = vadd.xlane.f32.xlu1 %v2153_v48 }
 0x3f4   : > { %2154 = vpow2.f32 %v1642_v28 }
 0x3f7   : > { %v1597_v51 = vpop.xlane.xlu2 %1596 }
 0x3f8   : > { %v3262_v53 = vsub.f32 %v3195_v30, %v1597_v51 }
 0x3fa   : > { %v2155_v27 = vpop.eup %2154  ;;  %v1644_v57 = vmul.f32 1.442695, %v3262_v53 }
 0x3fb   : > { %1674 = vadd.xlane.f32.xlu2 %v2155_v27 }
 0x3fc   : > { %2156 = vpow2.f32 %v1644_v57 }
 0x3ff   : > { %v1599_v34 = vpop.xlane.xlu0 %1598 }
 0x400   : > { %v3266_v47 = vsub.f32 %v3201_v62, %v1599_v34 }
 0x402   : > { %v2157_v55 = vpop.eup %2156  ;;  %v1646_v60 = vmul.f32 1.442695, %v3266_v47 }
 0x403   : > { %1676 = vadd.xlane.f32.xlu0 %v2157_v55 }
 0x404   : > { %2158 = vpow2.f32 %v1646_v60 }
 0x407   : > { %v1601_v0 = vpop.xlane.xlu1 %1600 }
 0x408   : > { %v3270_v30 = vsub.f32 %v3210_v40, %v1601_v0 }
 0x40a   : > { %v2159_v32 = vpop.eup %2158  ;;  %v1648_v52 = vmul.f32 1.442695, %v3270_v30 }
 0x40b   : > { %1678 = vadd.xlane.f32.xlu1 %v2159_v32 }
 0x40c   : > { %2160 = vpow2.f32 %v1648_v52 }
 0x40e   : > { %v1651_v42 = vpop.xlane.xlu2 %1650 }
 0x40f   : > { %2162 = vlog2.f32 %v1651_v42 }
 0x412   : > { %v2161_v62 = vpop.eup %2160 }
 0x413   : > { %1680 = vadd.xlane.f32.xlu2 %v2161_v62 }
 0x415   : > { %v2163_v35 = vpop.eup %2162 }
 0x416   : > { %v1683_v41 = vmul.f32 0.6931472, %v2163_v35  ;;  %v1653_v43 = vpop.xlane.xlu0 %1652 }
 0x417   : > { %2164 = vlog2.f32 %v1653_v43 }
 0x418   : > { %v1714_v56 = vsub.f32 %v3204_v18, %v1683_v41 }
 0x41a   : > { %1730 = vst [vmem:[%s3277_s11] sm:$0xff] %v1714_v56 }
 0x41d   : > { %v2165_v40 = vpop.eup %2164 }
 0x41e   : > { %v1685_v2 = vmul.f32 0.6931472, %v2165_v40  ;;  %v1655_v36 = vpop.xlane.xlu1 %1654 }
 0x41f   : > { %2166 = vlog2.f32 %v1655_v36 }
 0x420   : > { %v1715_v13 = vsub.f32 %v3214_v37, %v1685_v2 }
 0x422   : > { %1731 = vst [vmem:[%s3277_s11 + $0x8] sm:$0xff] %v1715_v13 }
 0x425   : > { %v2167_v5 = vpop.eup %2166 }
 0x426   : > { %v1687_v22 = vmul.f32 0.6931472, %v2167_v5  ;;  %v1657_v59 = vpop.xlane.xlu2 %1656 }
 0x427   : > { %2168 = vlog2.f32 %v1657_v59 }
 0x428   : > { %v1716_v18 = vsub.f32 %v3218_v1, %v1687_v22 }
 0x42a   : > { %1732 = vst [vmem:[%s3277_s11 + $0x10] sm:$0xff] %v1716_v18 }
 0x42d   : > { %v2169_v50 = vpop.eup %2168 }
 0x42e   : > { %v1689_v63 = vmul.f32 0.6931472, %v2169_v50  ;;  %v1659_v3 = vpop.xlane.xlu0 %1658 }
 0x42f   : > { %2170 = vlog2.f32 %v1659_v3 }
 0x430   : > { %v1717_v38 = vsub.f32 %v3222_v4, %v1689_v63 }
 0x432   : > { %1733 = vst [vmem:[%s3277_s11 + $0x18] sm:$0xff] %v1717_v38 }
 0x435   : > { %v2171_v16 = vpop.eup %2170 }
 0x436   : > { %v1691_v7 = vmul.f32 0.6931472, %v2171_v16  ;;  %v1661_v37 = vpop.xlane.xlu1 %1660 }
 0x437   : > { %2172 = vlog2.f32 %v1661_v37 }
 0x438   : > { %v1718_v8 = vsub.f32 %v3226_v14, %v1691_v7 }
 0x43a   : > { %1734 = vst [vmem:[%s3277_s11 + $0x20] sm:$0xff] %v1718_v8 }
 0x43d   : > { %v2173_v54 = vpop.eup %2172 }
 0x43e   : > { %v1693_v24 = vmul.f32 0.6931472, %v2173_v54  ;;  %v1663_v1 = vpop.xlane.xlu2 %1662 }
 0x43f   : > { %2174 = vlog2.f32 %v1663_v1 }
 0x440   : > { %v1719_v21 = vsub.f32 %v3230_v19, %v1693_v24 }
 0x442   : > { %1735 = vst [vmem:[%s3277_s11 + $0x28] sm:$0xff] %v1719_v21 }
 0x445   : > { %v2175_v9 = vpop.eup %2174 }
 0x446   : > { %v1695_v12 = vmul.f32 0.6931472, %v2175_v9  ;;  %v1665_v4 = vpop.xlane.xlu0 %1664 }
 0x447   : > { %2176 = vlog2.f32 %v1665_v4 }
 0x448   : > { %v1720_v15 = vsub.f32 %v3234_v20, %v1695_v12 }
 0x44a   : > { %1736 = vst [vmem:[%s3277_s11 + $0x30] sm:$0xff] %v1720_v15 }
 0x44d   : > { %v2177_v17 = vpop.eup %2176 }
 0x44e   : > { %v1697_v31 = vmul.f32 0.6931472, %v2177_v17  ;;  %v1667_v14 = vpop.xlane.xlu1 %1666 }
 0x44f   : > { %2178 = vlog2.f32 %v1667_v14 }
 0x450   : > { %v1721_v11 = vsub.f32 %v3238_v26, %v1697_v31 }
 0x452   : > { %1737 = vst [vmem:[%s3277_s11 + $0x38] sm:$0xff] %v1721_v11 }
 0x455   : > { %v2179_v6 = vpop.eup %2178 }
 0x456   : > { %v1699_v58 = vmul.f32 0.6931472, %v2179_v6  ;;  %v1669_v19 = vpop.xlane.xlu2 %1668 }
 0x457   : > { %2180 = vlog2.f32 %v1669_v19 }
 0x458   : > { %v1722_v44 = vsub.f32 %v3242_v10, %v1699_v58 }
 0x45a   : > { %1738 = vst [vmem:[%s3277_s11 + $0x40] sm:$0xff] %v1722_v44 }
 0x45d   : > { %v2181_v45 = vpop.eup %2180 }
 0x45e   : > { %v1701_v29 = vmul.f32 0.6931472, %v2181_v45  ;;  %v1671_v20 = vpop.xlane.xlu0 %1670 }
 0x45f   : > { %2182 = vlog2.f32 %v1671_v20 }
 0x460   : > { %v1723_v46 = vsub.f32 %v3246_v25, %v1701_v29 }
 0x462   : > { %1739 = vst [vmem:[%s3277_s11 + $0x48] sm:$0xff] %v1723_v46 }
 0x465   : > { %v2183_v23 = vpop.eup %2182 }
 0x466   : > { %v1703_v61 = vmul.f32 0.6931472, %v2183_v23  ;;  %v1673_v26 = vpop.xlane.xlu1 %1672 }
 0x467   : > { %2184 = vlog2.f32 %v1673_v26 }
 0x468   : > { %v1724_v48 = vsub.f32 %v3250_v33, %v1703_v61 }
 0x46a   : > { %1740 = vst [vmem:[%s3277_s11 + $0x50] sm:$0xff] %v1724_v48 }
 0x46d   : > { %v2185_v28 = vpop.eup %2184 }
 0x46e   : > { %v1705_v51 = vmul.f32 0.6931472, %v2185_v28  ;;  %v1675_v10 = vpop.xlane.xlu2 %1674 }
 0x46f   : > { %2186 = vlog2.f32 %v1675_v10 }
 0x470   : > { %v1725_v27 = vsub.f32 %v3254_v39, %v1705_v51 }
 0x472   : > { %1741 = vst [vmem:[%s3277_s11 + $0x58] sm:$0xff] %v1725_v27 }
 0x475   : > { %v2187_v57 = vpop.eup %2186 }
 0x476   : > { %v1707_v25 = vmul.f32 0.6931472, %v2187_v57  ;;  %v1677_v34 = vpop.xlane.xlu0 %1676 }
 0x477   : > { %2188 = vlog2.f32 %v1677_v34 }
 0x478   : > { %v1726_v55 = vsub.f32 %v3258_v49, %v1707_v25 }
 0x47a   : > { %1742 = vst [vmem:[%s3277_s11 + $0x60] sm:$0xff] %v1726_v55 }
 0x47d   : > { %v2189_v33 = vpop.eup %2188 }
 0x47e   : > { %v1709_v60 = vmul.f32 0.6931472, %v2189_v33  ;;  %v1679_v0 = vpop.xlane.xlu1 %1678 }
 0x47f   : > { %2190 = vlog2.f32 %v1679_v0 }
 0x480   : > { %v1727_v32 = vsub.f32 %v3262_v53, %v1709_v60 }
 0x482   : > { %1743 = vst [vmem:[%s3277_s11 + $0x68] sm:$0xff] %v1727_v32 }
 0x485   : > { %v2191_v39 = vpop.eup %2190 }
 0x486   : > { %v1711_v52 = vmul.f32 0.6931472, %v2191_v39  ;;  %v1681_v42 = vpop.xlane.xlu2 %1680 }
 0x487   : > { %2192 = vlog2.f32 %v1681_v42 }
 0x488   : > { %v1728_v62 = vsub.f32 %v3266_v47, %v1711_v52 }
 0x48a   : > { %1744 = vst [vmem:[%s3277_s11 + $0x70] sm:$0xff] %v1728_v62 }
 0x48d   : > { %v2193_v49 = vpop.eup %2192 }
 0x48e   : > { %v1713_v53 = vmul.f32 0.6931472, %v2193_v49 }
 0x490   : > { %v1729_v35 = vsub.f32 %v3270_v30, %v1713_v53 }
 0x492   : > { %1745 = vst [vmem:[%s3277_s11 + $0x78] sm:$0xff] %v1729_v35 }
 0x493   : > { %2221 = shalt.err (!%p2218_p3)
}
 0x494   : > { %s2263_s9 = smov 128   ;;  %s2264_s11 = smov 8  }
 0x495   : > { %2053 = dma.vmem_to_hbm [thread:$0]  (%p2338_p5), %s1760_s17, 2048, %s1762_s18, %s1747_s25, %s2263_s9, %s2263_s9, %s2264_s11  }
 0x496 PF: > { %p2059_p4 = scmp.ge.s32.totalorder %s2256_s24, 2  ;;  %s1776_s12 = sand.u32 1, %s2244_s21  }
 0x497   : > { %s1777_s14 = scalar_lea.sflag [#allocation3], %s1776_s12 }
 0x498   : > { %p2056_p7 = pnand %p2059_p4, %p2342_p6 }
 0x49a   : > { %p2057_p8 = pneg %p2056_p7 }
 0x49c   : > { %2239 = dma.done.wait (%p2057_p8), %s1777_s14, 2048  }
 0x49d   : > { %2241 = vsyncadd (%p2057_p8), %s1777_s14, 4294965248  ;;  %p16_p9 = scmp.ge.s32.totalorder %s2325_s27, 4   ;;  %s3353_s21 = smov %s2248_s22 }
 0x49e   : > { %s3354_s22 = smov %s2252_s23  ;;  %s3355_s23 = smov %s2336_s30 }
 0x49f   : > { %s3356_s24 = smov %s2325_s27  ;;  %18 = sbr.rel (!%p16_p9) target bundleno = 3 (0x3), region = 79 }
 0x4a4   :  { %1783 = vsyncpa [#allocation3], 1 }
 0x4a5   :  { %1785 = vsyncpa [#allocation3 + $0x1], 1 }

</bundles_post_ra>
